<compile_context>
chip_gen: v6e
topology: v6e:2x2x1
jax: 0.10.0
libtpu: 0.0.40
codegen_flags: <defaults>
</compile_context>

<pallas_src>
import jax
import jax.numpy as jnp
from jax import lax
from jax.experimental import pallas as pl
from jax.experimental.pallas import tpu as pltpu


# ----- "config" -----
DIM_MODEL = 32
DIM_INNER = 64
LN_EPS = 1e-5
LANES = 128
PACK = LANES // DIM_MODEL        # 4 tokens packed per 128-lane row


def _cdiv(a, b):
    return -(-a // b)


def _ff_kernel(x_ref, w1_ref, b1_ref, w2_ref, b2_ref, g_ref, be_ref, seg_ref, o_ref):
    # x_ref: (block, 128) f32 -- each row holds PACK=4 tokens of 32 features.
    x = x_ref[...]

    # Linear 1 (block-diagonal packed weights) + bias
    h = jnp.dot(x, w1_ref[...], preferred_element_type=jnp.float32,
                precision=lax.Precision.HIGHEST) + b1_ref[...]

    # Dropout (identity in eval) -> SiLU
    h = h * jax.nn.sigmoid(h)

    # Linear 2 + bias, Dropout (identity), residual
    y = jnp.dot(h, w2_ref[...], preferred_element_type=jnp.float32,
                precision=lax.Precision.HIGHEST) + b2_ref[...]
    r = y + x

    # LayerNorm per token: mean/var over each 32-lane segment, expressed as matmuls
    # against a block-diagonal averaging matrix (broadcast back onto the segment),
    # so the reduction rides the otherwise-idle MXU instead of the XLU.
    mean = jnp.dot(r, seg_ref[...], preferred_element_type=jnp.float32,
                   precision=lax.Precision.HIGHEST)
    c = r - mean
    var = jnp.dot(c * c, seg_ref[...], preferred_element_type=jnp.float32,
                  precision=lax.Precision.HIGHEST)
    out = c * lax.rsqrt(var + LN_EPS) * g_ref[...] + be_ref[...]

    o_ref[...] = out.astype(o_ref.dtype)


def pack_params(w1, b1, w2, b2, gamma, beta):
    """Build packed (block-diagonal / tiled) parameters ONCE; reuse on every call."""
    eye = jnp.eye(PACK, dtype=jnp.float32)
    w1p = jnp.kron(eye, w1.astype(jnp.float32))                          # (128, 256)
    w2p = jnp.kron(eye, w2.astype(jnp.float32))                          # (256, 128)
    b1p = jnp.tile(b1.astype(jnp.float32), (PACK,)).reshape(1, PACK * DIM_INNER)
    b2p = jnp.tile(b2.astype(jnp.float32), (PACK,)).reshape(1, LANES)
    gp = jnp.tile(gamma.astype(jnp.float32), (PACK,)).reshape(1, LANES)
    bp = jnp.tile(beta.astype(jnp.float32), (PACK,)).reshape(1, LANES)
    segm = jnp.kron(eye, jnp.full((DIM_MODEL, DIM_MODEL), 1.0 / DIM_MODEL,
                                  dtype=jnp.float32))                    # (128, 128)
    return (w1p, b1p, w2p, b2p, gp, bp, segm)


def _choose_block(rows, block_rows):
    if rows <= 8:
        return rows                      # single full-extent block (allowed: == full dim)
    b = min(block_rows, rows)
    b = max(8, (b // 8) * 8)             # multiple of 8 sublanes
    # Keep >= 2 grid steps when there is enough work so the single "parallel"
    # grid axis can shard across both v7x TensorCores.
    if rows >= 16 and _cdiv(rows, b) < 2:
        b = max(8, _cdiv(_cdiv(rows, 2), 8) * 8)
    return b


def feed_forward(x, packed_params, *, block_rows=2048,
                 vmem_limit_bytes=32 * 1024 * 1024):
    """x: (..., dim_model) float32. Returns same shape.

    block_rows = packed 128-lane rows per grid step (= 4*block_rows tokens).
    Default 2048 rows -> 8192 tokens -> 1 MiB f32 x-tile, amortizing the ~0.35us
    per-grid-step overhead (matters most on v7x's 3.2 TB/s HBM). vmem_limit_bytes
    is set explicitly so the same tiling also fits v5e's 16 MiB scoped default.
    """
    w1p, b1p, w2p, b2p, gp, bp, segm = packed_params
    orig_shape = x.shape
    d = orig_shape[-1]
    assert d == DIM_MODEL
    n = 1
    for s in orig_shape[:-1]:
        n *= s

    x2d = x.reshape(n, d)

    # Pack PACK tokens per 128-lane row (free contiguous reshape). Only a tiny
    # (<= PACK-1 token) pad is needed when n isn't a multiple of PACK; skipped
    # entirely when it is.  The partial last *row-block* is handled by Pallas
    # masking (grid = cdiv), not by padding, so no extra HBM copies.
    pad_tokens = (-n) % PACK
    if pad_tokens:
        x2d = jnp.pad(x2d, ((0, pad_tokens), (0, 0)))
    rows = (n + pad_tokens) // PACK
    xp = x2d.reshape(rows, LANES)                     # lane-dense; free reshape

    block = _choose_block(rows, block_rows)
    grid = _cdiv(rows, block)

    outp = pl.pallas_call(
        _ff_kernel,
        out_shape=jax.ShapeDtypeStruct((rows, LANES), x.dtype),
        grid_spec=pltpu.PrefetchScalarGridSpec(
            num_scalar_prefetch=0,
            grid=(grid,),
            in_specs=[
                pl.BlockSpec((block, LANES), lambda i: (i, 0)),             # x tile
                pl.BlockSpec((LANES, PACK * DIM_INNER), lambda i: (0, 0)),  # w1 (resident)
                pl.BlockSpec((1, PACK * DIM_INNER), lambda i: (0, 0)),      # b1
                pl.BlockSpec((PACK * DIM_INNER, LANES), lambda i: (0, 0)),  # w2
                pl.BlockSpec((1, LANES), lambda i: (0, 0)),                 # b2
                pl.BlockSpec((1, LANES), lambda i: (0, 0)),                 # gamma
                pl.BlockSpec((1, LANES), lambda i: (0, 0)),                 # beta
                pl.BlockSpec((LANES, LANES), lambda i: (0, 0)),             # seg-mean mat
            ],
            out_specs=pl.BlockSpec((block, LANES), lambda i: (i, 0)),
        ),
        compiler_params=pltpu.CompilerParams(
            dimension_semantics=("parallel",),        # 2-TC sharding on v7x
            vmem_limit_bytes=vmem_limit_bytes),
    )(xp, w1p, b1p, w2p, b2p, gp, bp, segm)

    out = outp.reshape(rows * PACK, d)
    if pad_tokens:
        out = out[:n]
    return out.reshape(orig_shape)


def _reference(x, w1, b1, w2, b2, gamma, beta):
    h = jnp.dot(x, w1, precision=lax.Precision.HIGHEST) + b1
    h = h * jax.nn.sigmoid(h)
    y = jnp.dot(h, w2, precision=lax.Precision.HIGHEST) + b2
    r = y + x
    mean = jnp.mean(r, axis=-1, keepdims=True)
    var = jnp.mean((r - mean) ** 2, axis=-1, keepdims=True)
    return (r - mean) / jnp.sqrt(var + LN_EPS) * gamma + beta


if __name__ == "__main__":
    key = jax.random.PRNGKey(0)
    kx, k1, kb1, k2, kb2 = jax.random.split(key, 5)

    batch, seq = 2, 8
    x = jax.random.normal(kx, (batch, seq, DIM_MODEL), dtype=jnp.float32)

    # Deterministic parameter init (uniform, PyTorch-Linear-like fan-in scaling).
    lim1 = 1.0 / (DIM_MODEL ** 0.5)
    lim2 = 1.0 / (DIM_INNER ** 0.5)
    w1 = jax.random.uniform(k1, (DIM_MODEL, DIM_INNER), jnp.float32, -lim1, lim1)
    b1 = jax.random.uniform(kb1, (DIM_INNER,), jnp.float32, -lim1, lim1)
    w2 = jax.random.uniform(k2, (DIM_INNER, DIM_MODEL), jnp.float32, -lim2, lim2)
    b2 = jax.random.uniform(kb2, (DIM_MODEL,), jnp.float32, -lim2, lim2)
    gamma = jnp.ones((DIM_MODEL,), jnp.float32)
    beta = jnp.zeros((DIM_MODEL,), jnp.float32)

    # Packed parameters built once (hoisted out of the per-call wrapper).
    packed = pack_params(w1, b1, w2, b2, gamma, beta)

    out = feed_forward(x, packed)
    out = jax.block_until_ready(out)

    ref = _reference(x, w1, b1, w2, b2, gamma, beta)
    assert out.shape == x.shape
    assert jnp.allclose(out, ref, atol=1e-4, rtol=1e-4)

    print("KERNEL_OK")
</pallas_src>

<mosaic_0001>
module attributes {stable_mosaic.version = 11 : i64} {
  func.func @_ff_kernel(%arg0: i32, %arg1: memref<4x128xf32, #tpu.memory_space<vmem>>, %arg2: memref<128x256xf32, #tpu.memory_space<vmem>>, %arg3: memref<1x256xf32, #tpu.memory_space<vmem>>, %arg4: memref<256x128xf32, #tpu.memory_space<vmem>>, %arg5: memref<1x128xf32, #tpu.memory_space<vmem>>, %arg6: memref<1x128xf32, #tpu.memory_space<vmem>>, %arg7: memref<1x128xf32, #tpu.memory_space<vmem>>, %arg8: memref<128x128xf32, #tpu.memory_space<vmem>>, %arg9: memref<4x128xf32, #tpu.memory_space<vmem>>) attributes {dimension_semantics = [#tpu.dimension_semantics<parallel>], iteration_bounds = array<i64: 1>, scalar_prefetch = 0 : i64, scratch_operands = 0 : i64, tpu.core_type = #tpu.core_type<tc>, window_params = [{transform_indices = @transform_0, window_bounds = array<i64: 4, 128>}, {pipeline_mode = #tpu.pipeline_mode<synchronous>, transform_indices = @transform_1, window_bounds = array<i64: 128, 256>}, {pipeline_mode = #tpu.pipeline_mode<synchronous>, transform_indices = @transform_2, window_bounds = array<i64: 1, 256>}, {pipeline_mode = #tpu.pipeline_mode<synchronous>, transform_indices = @transform_3, window_bounds = array<i64: 256, 128>}, {pipeline_mode = #tpu.pipeline_mode<synchronous>, transform_indices = @transform_4, window_bounds = array<i64: 1, 128>}, {pipeline_mode = #tpu.pipeline_mode<synchronous>, transform_indices = @transform_5, window_bounds = array<i64: 1, 128>}, {pipeline_mode = #tpu.pipeline_mode<synchronous>, transform_indices = @transform_6, window_bounds = array<i64: 1, 128>}, {pipeline_mode = #tpu.pipeline_mode<synchronous>, transform_indices = @transform_7, window_bounds = array<i64: 128, 128>}, {transform_indices = @transform_8, window_bounds = array<i64: 4, 128>}]} {
    %c0 = arith.constant 0 : index
    %c0_0 = arith.constant 0 : index
    %0 = vector.load %arg1[%c0, %c0_0] : memref<4x128xf32, #tpu.memory_space<vmem>>, vector<4x128xf32>
    %c0_1 = arith.constant 0 : index
    %c0_2 = arith.constant 0 : index
    %1 = vector.load %arg2[%c0_1, %c0_2] : memref<128x256xf32, #tpu.memory_space<vmem>>, vector<128x256xf32>
    %cst = arith.constant dense<0.000000e+00> : vector<4x256xf32>
    %2 = tpu.matmul %0, %1, %cst {dimension_numbers = #tpu.dot_dimension_numbers<[1], [0], [0], [1], [0, 0, 1, 1], [], []>, precision = #tpu.contract_precision<fp32>} : vector<4x128xf32>, vector<128x256xf32>, vector<4x256xf32> -> vector<4x256xf32>
    %c0_3 = arith.constant 0 : index
    %c0_4 = arith.constant 0 : index
    %3 = vector.load %arg3[%c0_3, %c0_4] : memref<1x256xf32, #tpu.memory_space<vmem>>, vector<1x256xf32>
    %4 = vector.broadcast %3 : vector<1x256xf32> to vector<4x256xf32>
    %5 = arith.addf %2, %4 : vector<4x256xf32>
    %6 = arith.negf %5 : vector<4x256xf32>
    %7 = math.exp %6 : vector<4x256xf32>
    %cst_5 = arith.constant 1.000000e+00 : f32
    %8 = vector.broadcast %cst_5 : f32 to vector<4x256xf32>
    %9 = arith.addf %8, %7 : vector<4x256xf32>
    %10 = arith.divf %8, %9 : vector<4x256xf32>
    %11 = arith.mulf %5, %10 : vector<4x256xf32>
    %c0_6 = arith.constant 0 : index
    %c0_7 = arith.constant 0 : index
    %12 = vector.load %arg4[%c0_6, %c0_7] : memref<256x128xf32, #tpu.memory_space<vmem>>, vector<256x128xf32>
    %cst_8 = arith.constant dense<0.000000e+00> : vector<4x128xf32>
    %13 = tpu.matmul %11, %12, %cst_8 {dimension_numbers = #tpu.dot_dimension_numbers<[1], [0], [0], [1], [0, 0, 1, 1], [], []>, precision = #tpu.contract_precision<fp32>} : vector<4x256xf32>, vector<256x128xf32>, vector<4x128xf32> -> vector<4x128xf32>
    %c0_9 = arith.constant 0 : index
    %c0_10 = arith.constant 0 : index
    %14 = vector.load %arg5[%c0_9, %c0_10] : memref<1x128xf32, #tpu.memory_space<vmem>>, vector<1x128xf32>
    %15 = vector.broadcast %14 : vector<1x128xf32> to vector<4x128xf32>
    %16 = arith.addf %13, %15 : vector<4x128xf32>
    %17 = arith.addf %16, %0 : vector<4x128xf32>
    %c0_11 = arith.constant 0 : index
    %c0_12 = arith.constant 0 : index
    %18 = vector.load %arg8[%c0_11, %c0_12] : memref<128x128xf32, #tpu.memory_space<vmem>>, vector<128x128xf32>
    %cst_13 = arith.constant dense<0.000000e+00> : vector<4x128xf32>
    %19 = tpu.matmul %17, %18, %cst_13 {dimension_numbers = #tpu.dot_dimension_numbers<[1], [0], [0], [1], [0, 0, 1, 1], [], []>, precision = #tpu.contract_precision<fp32>} : vector<4x128xf32>, vector<128x128xf32>, vector<4x128xf32> -> vector<4x128xf32>
    %20 = arith.subf %17, %19 : vector<4x128xf32>
    %21 = arith.mulf %20, %20 : vector<4x128xf32>
    %c0_14 = arith.constant 0 : index
    %c0_15 = arith.constant 0 : index
    %22 = vector.load %arg8[%c0_14, %c0_15] : memref<128x128xf32, #tpu.memory_space<vmem>>, vector<128x128xf32>
    %cst_16 = arith.constant dense<0.000000e+00> : vector<4x128xf32>
    %23 = tpu.matmul %21, %22, %cst_16 {dimension_numbers = #tpu.dot_dimension_numbers<[1], [0], [0], [1], [0, 0, 1, 1], [], []>, precision = #tpu.contract_precision<fp32>} : vector<4x128xf32>, vector<128x128xf32>, vector<4x128xf32> -> vector<4x128xf32>
    %cst_17 = arith.constant 9.99999974E-6 : f32
    %24 = vector.broadcast %cst_17 : f32 to vector<4x128xf32>
    %25 = arith.addf %23, %24 : vector<4x128xf32>
    %26 = math.rsqrt %25 : vector<4x128xf32>
    %27 = arith.mulf %20, %26 : vector<4x128xf32>
    %c0_18 = arith.constant 0 : index
    %c0_19 = arith.constant 0 : index
    %28 = vector.load %arg6[%c0_18, %c0_19] : memref<1x128xf32, #tpu.memory_space<vmem>>, vector<1x128xf32>
    %29 = vector.broadcast %28 : vector<1x128xf32> to vector<4x128xf32>
    %30 = arith.mulf %27, %29 : vector<4x128xf32>
    %c0_20 = arith.constant 0 : index
    %c0_21 = arith.constant 0 : index
    %31 = vector.load %arg7[%c0_20, %c0_21] : memref<1x128xf32, #tpu.memory_space<vmem>>, vector<1x128xf32>
    %32 = vector.broadcast %31 : vector<1x128xf32> to vector<4x128xf32>
    %33 = arith.addf %30, %32 : vector<4x128xf32>
    %c0_22 = arith.constant 0 : index
    %c0_23 = arith.constant 0 : index
    %34 = vector.load %arg9[%c0_22, %c0_23] : memref<4x128xf32, #tpu.memory_space<vmem>>, vector<4x128xf32>
    tpu.vector_store %arg9[%c0_22, %c0_23], %33 {strides = array<i32>} : memref<4x128xf32, #tpu.memory_space<vmem>>, vector<4x128xf32>,
    return
  }
  func.func @transform_0(%arg0: i32) -> (i32, i32) {
    %c0_i32 = arith.constant 0 : i32
    %c0_i32_0 = arith.constant 0 : i32
    return %arg0, %c0_i32 : i32, i32
  }
  func.func @transform_1(%arg0: i32) -> (i32, i32) {
    %c0_i32 = arith.constant 0 : i32
    %c0_i32_0 = arith.constant 0 : i32
    %c0_i32_1 = arith.constant 0 : i32
    return %c0_i32, %c0_i32_0 : i32, i32
  }
  func.func @transform_2(%arg0: i32) -> (i32, i32) {
    %c0_i32 = arith.constant 0 : i32
    %c0_i32_0 = arith.constant 0 : i32
    %c0_i32_1 = arith.constant 0 : i32
    return %c0_i32, %c0_i32_0 : i32, i32
  }
  func.func @transform_3(%arg0: i32) -> (i32, i32) {
    %c0_i32 = arith.constant 0 : i32
    %c0_i32_0 = arith.constant 0 : i32
    %c0_i32_1 = arith.constant 0 : i32
    return %c0_i32, %c0_i32_0 : i32, i32
  }
  func.func @transform_4(%arg0: i32) -> (i32, i32) {
    %c0_i32 = arith.constant 0 : i32
    %c0_i32_0 = arith.constant 0 : i32
    %c0_i32_1 = arith.constant 0 : i32
    return %c0_i32, %c0_i32_0 : i32, i32
  }
  func.func @transform_5(%arg0: i32) -> (i32, i32) {
    %c0_i32 = arith.constant 0 : i32
    %c0_i32_0 = arith.constant 0 : i32
    %c0_i32_1 = arith.constant 0 : i32
    return %c0_i32, %c0_i32_0 : i32, i32
  }
  func.func @transform_6(%arg0: i32) -> (i32, i32) {
    %c0_i32 = arith.constant 0 : i32
    %c0_i32_0 = arith.constant 0 : i32
    %c0_i32_1 = arith.constant 0 : i32
    return %c0_i32, %c0_i32_0 : i32, i32
  }
  func.func @transform_7(%arg0: i32) -> (i32, i32) {
    %c0_i32 = arith.constant 0 : i32
    %c0_i32_0 = arith.constant 0 : i32
    %c0_i32_1 = arith.constant 0 : i32
    return %c0_i32, %c0_i32_0 : i32, i32
  }
  func.func @transform_8(%arg0: i32) -> (i32, i32) {
    %c0_i32 = arith.constant 0 : i32
    %c0_i32_0 = arith.constant 0 : i32
    return %arg0, %c0_i32 : i32, i32
  }
}

</mosaic_0001>

<bundles_post_ra>
// kernel: tpu_custom_call.1
= control target key start
LH: loop header
LB: loop body
LE: loop exit
PB: predicated region body
PF: predicated region fallthrough
CT: control target
= control target key end

     0   :  { %13 = vsyncpa [#allocation3], 0  ;;  %s6013_s0 = inlined_call_operand.hbm [shape: f32[4,128], index: 0, kind: input, shape index: {}]   ;;  %s6014_s1 = inlined_call_operand.hbm [shape: f32[128,256], index: 1, kind: input, shape index: {}]   ;;  %s6015_s2 = inlined_call_operand.vmem [shape: f32[1,256], index: 2, kind: input, shape index: {}]   ;;  %s6016_s3 = inlined_call_operand.hbm [shape: f32[256,128], index: 3, kind: input, shape index: {}]   ;;  %s6017_s4 = inlined_call_operand.vmem [shape: f32[1,128], index: 4, kind: input, shape index: {}]   ;;  %s6018_s5 = inlined_call_operand.vmem [shape: f32[1,128], index: 5, kind: input, shape index: {}]   ;;  %s6019_s6 = inlined_call_operand.vmem [shape: f32[1,128], index: 6, kind: input, shape index: {}]   ;;  %s6020_s7 = inlined_call_operand.hbm [shape: f32[128,128], index: 7, kind: input, shape index: {}]   ;;  %s6021_s8 = inlined_call_operand.hbm [shape: f32[4,128], index: 8, kind: output, shape index: {}]  }
   0x1   :  { %14 = vsyncpa [#allocation6], 0 }
   0x2   :  { %15 = vsyncpa [#allocation9], 0 }
   0x3   :  { %16 = vsyncpa [#allocation4], 0  ;;  %s4204_s27 = smov [#allocation5]  }
   0x4   :  { %s32_s28 = sshll.u32 %s4204_s27, 4  ;;  %s33_s28 = int_to_ptr.vmem [resolvable:$true] %s32_s28 }
   0x5   :  { %s4104_s29 = scalar_lea.vmem %s33_s28, 4096  ;;  %p4109_p1 = scmp.lt.s32.totalorder %s33_s28, %s33_s28 }
   0x6   :  { %p4105_p0 = scmp.ne.s32.totalorder %s33_s28, %s4104_s29  ;;  %p4110_p2 = scmp.lt.s32.totalorder %s4104_s29, %s4104_s29 }
   0x8   :  { %p4111_p3 = por %p4110_p2, %p4109_p1 }
   0xa   :  { %p4112_p4 = pnand %p4111_p3, %p4105_p0 }
   0xc   :  { %4115 = shalt.err (!%p4112_p4)
}
   0xd   :  { %s4205_s30 = smov 256   ;;  %s4206_s9 = smov 16  }
   0xe   :  { %38 = dma.hbm_to_vmem [thread:$0]  %s6014_s1, 4096, %s33_s28, [#allocation6], %s4205_s30, %s4205_s30, %s4206_s9  }
   0xf   :  { %s4207_s12 = smov [#allocation2]   ;;  %s4208_s14 = smov [#allocation7]  }
  0x10   :  { %s23_s13 = sshll.u32 %s4207_s12, 4  ;;  %s46_s15 = sshll.u32 %s4208_s14, 4  ;;  %s24_s13 = int_to_ptr.vmem [resolvable:$true] %s23_s13  ;;  %s47_s15 = int_to_ptr.vmem [resolvable:$true] %s46_s15 }
  0x11   :  { %s4124_s16 = scalar_lea.vmem %s24_s13, 64  ;;  %p4129_p6 = scmp.lt.s32.totalorder %s24_s13, %s24_s13 }
  0x12   :  { %p4125_p5 = scmp.ne.s32.totalorder %s24_s13, %s4124_s16  ;;  %p4130_p7 = scmp.lt.s32.totalorder %s4124_s16, %s4124_s16 }
  0x14   :  { %p4131_p8 = por %p4130_p7, %p4129_p6 }
  0x16   :  { %p4132_p9 = pnand %p4131_p8, %p4125_p5 }
  0x18   :  { %4135 = shalt.err (!%p4132_p9)
}
  0x19   :  { %26 = dma.hbm_to_vmem [thread:$0]  %s6013_s0, 64, %s24_s13, [#allocation3]  }
  0x1a   :  { %s4144_s19 = scalar_lea.vmem %s47_s15, 4096  ;;  %p4149_p11 = scmp.lt.s32.totalorder %s47_s15, %s47_s15 }
  0x1b   :  { %p4145_p10 = scmp.ne.s32.totalorder %s47_s15, %s4144_s19  ;;  %p4150_p12 = scmp.lt.s32.totalorder %s4144_s19, %s4144_s19 }
  0x1d   :  { %p4151_p13 = por %p4150_p12, %p4149_p11 }
  0x1f   :  { %p4152_p0 = pnand %p4151_p13, %p4145_p10 }
  0x21   :  { %4155 = shalt.err (!%p4152_p0)
}
  0x22   :  { %s4209_s1 = smov 128   ;;  %s4210_s20 = smov 8  }
  0x23   :  { %52 = dma.hbm_to_vmem [thread:$0]  %s6016_s3, 4096, %s47_s15, [#allocation6], %s4209_s1, %s4209_s1, %s4210_s20  }
  0x24   :  { %s4211_s23 = smov [#allocation8]  }
  0x25   :  { %s64_s24 = sshll.u32 %s4211_s23, 4  ;;  %s65_s24 = int_to_ptr.vmem [resolvable:$true] %s64_s24 }
  0x26   :  { %s4164_s25 = scalar_lea.vmem %s65_s24, 2048  ;;  %p4169_p2 = scmp.lt.s32.totalorder %s65_s24, %s65_s24 }
  0x27   :  { %p4165_p1 = scmp.ne.s32.totalorder %s65_s24, %s4164_s25  ;;  %p4170_p3 = scmp.lt.s32.totalorder %s4164_s25, %s4164_s25 }
  0x29   :  { %p4171_p4 = por %p4170_p3, %p4169_p2 }
  0x2b   :  { %p4172_p5 = pnand %p4171_p4, %p4165_p1 }
  0x2d   :  { %4175 = shalt.err (!%p4172_p5)
}
  0x2e   :  { %70 = dma.hbm_to_vmem [thread:$0]  %s6020_s7, 2048, %s65_s24, [#allocation9], %s4209_s1, %s4209_s1, %s4210_s20  }
  0x2f   :  { %4196 = dma.done.wait [#allocation3], 64  }
  0x30   :  { %4197 = vsyncadd [#allocation3], 4294967232 }
  0x31   :  { %4198 = dma.done.wait [#allocation6], 8192  }
  0x32   :  { %4199 = vsyncadd [#allocation6], 4294959104 }
  0x33   :  { %4200 = dma.done.wait [#allocation9], 2048  }
  0x34   :  { %4201 = vsyncadd [#allocation9], 4294965248  ;;  %v6036_v0 = vmov 0.0   ;;  %v115_v1 = vld [vmem:[#allocation5 + $0xf8] sm:$0xff]  ;;  %v114_v2 = vld [vmem:[#allocation5 + $0xf0] sm:$0xff]  ;;  %vm4213_vm0 = vmmov 0  }
  0x35   :  { %224 = vmatprep.mubr.f32.mxu0 %v6036_v0  ;;  %460 = vmatprep.mubr.f32.mxu1 %v6036_v0  ;;  %v113_v3 = vld [vmem:[#allocation5 + $0xe8] sm:$0xff]  ;;  %v4274_v4 = vand.u32 4294901760, %v115_v1  ;;  %v4276_v5 = vand.u32 4294901760, %v114_v2  ;;  %v112_v7 = vld [vmem:[#allocation5 + $0xe0] sm:$0xff]  ;;  %v111_v8 = vld [vmem:[#allocation5 + $0xd8] sm:$0xff]  ;;  %s4214_s9 = smov [#allocation10]  }
  0x36   :  { %v4278_v6 = vand.u32 4294901760, %v113_v3  ;;  %v110_v9 = vld [vmem:[#allocation5 + $0xd0] sm:$0xff]  ;;  %v4280_v10 = vand.u32 4294901760, %v112_v7  ;;  %v4282_v11 = vand.u32 4294901760, %v111_v8  ;;  %v109_v13 = vld [vmem:[#allocation5 + $0xc8] sm:$0xff]  ;;  %v108_v14 = vld [vmem:[#allocation5 + $0xc0] sm:$0xff] }
  0x37   :  { %v4284_v12 = vand.u32 4294901760, %v110_v9  ;;  %v107_v15 = vld [vmem:[#allocation5 + $0xb8] sm:$0xff]  ;;  %129 = vmatprep.subr.mxu0 %v4274_v4  ;;  %v4287_v16 = vand.u32 4294901760, %v109_v13  ;;  %v4289_v17 = vand.u32 4294901760, %v108_v14  ;;  %v4294_v19 = vsub.f32 %v115_v1, %v4274_v4  ;;  %v4296_v20 = vld [vmem:[#allocation5 + $0xb0] sm:$0xff]  ;;  %v4298_v21 = vld [vmem:[#allocation5 + $0xa8] sm:$0xff] }
  0x38   :  { %v4291_v18 = vand.u32 4294901760, %v107_v15  ;;  %v4300_v22 = vld [vmem:[#allocation5 + $0xa0] sm:$0xff]  ;;  %131 = vmatpush1.msra.mxu0 %v4276_v5  ;;  %v4304_v23 = vand.u32 4294901760, %v4296_v20  ;;  %v4307_v24 = vsub.f32 %v114_v2, %v4276_v5  ;;  %v4310_v25 = vand.u32 4294901760, %v4298_v21  ;;  %v4315_v27 = vld [vmem:[#allocation5 + $0x98] sm:$0xff]  ;;  %v4317_v28 = vld [vmem:[#allocation5 + $0x90] sm:$0xff] }
  0x39   :  { %v4313_v26 = vsub.f32 %v113_v3, %v4278_v6  ;;  %v4319_v29 = vld [vmem:[#allocation5 + $0x88] sm:$0xff]  ;;  %133 = vmatprep.subr.mxu0 %v4278_v6  ;;  %v6034_v30 = vand.u32 4294901760, %v4294_v19  ;;  %v4324_v31 = vand.u32 4294901760, %v4300_v22  ;;  %v4327_v32 = vsub.f32 %v112_v7, %v4280_v10  ;;  %v4341_v38 = vld [vmem:[#allocation5 + $0x80] sm:$0xff]  ;;  %v4365_v47 = vld [vmem:[#allocation5 + $0x78] sm:$0xff]  ;;  %s3224_s10 = sshll.u32 %s4214_s9, 4  ;;  %s3225_s10 = int_to_ptr.vmem [resolvable:$true] %s3224_s10 }
  0x3a   :  { %v4330_v33 = vand.u32 4294901760, %v4315_v27  ;;  %135 = vmatpush1.msra.mxu0 %v4280_v10  ;;  %v6033_v34 = vand.u32 4294901760, %v4307_v24  ;;  %v4336_v36 = vsub.f32 %v111_v8, %v4282_v11  ;;  %v4339_v37 = vand.u32 4294901760, %v4317_v28  ;;  %v4375_v52 = vld [vmem:[#allocation5 + $0x70] sm:$0xff]  ;;  %v4382_v57 = vld [vmem:[#allocation5 + $0x68] sm:$0xff]  ;;  %v4394_v62 = vld [vmem:[#allocation5 + $0x60] sm:$0xff]  ;;  %p4181_p7 = scmp.lt.s32.totalorder %s3225_s10, %s3225_s10 }
  0x3b   :  { %6206 = vst [vmem:[#allocation15_spill] sm:$0xff] %v4324_v31  ;;  %v6031_v35 = vand.u32 4294901760, %v4313_v26  ;;  %137 = vmatprep.subr.mxu0 %v4282_v11  ;;  %v239_v39 = vsub.f32 %v4294_v19, %v6034_v30  ;;  %v6029_v40 = vand.u32 4294901760, %v4327_v32  ;;  %v4349_v41 = vsub.f32 %v110_v9, %v4284_v12  ;;  %v4406_v7 = vld [vmem:[#allocation5 + $0x58] sm:$0xff]  ;;  %s4176_s11 = scalar_lea.vmem %s3225_s10, 64 }
  0x3c   :  { %6207 = vst [vmem:[#allocation16_spill] sm:$0xff] %v4330_v33  ;;  %6208 = vst [vmem:[#allocation17_spill] sm:$0xff] %v4339_v37  ;;  %v4352_v42 = vand.u32 4294901760, %v4319_v29  ;;  %139 = vmatpush1.msra.mxu0 %v4284_v12  ;;  %v245_v43 = vsub.f32 %v4307_v24, %v6033_v34  ;;  %v6028_v45 = vand.u32 4294901760, %v4336_v36  ;;  %v4363_v46 = vsub.f32 %v109_v13, %v4287_v16  ;;  %v4507_v34 = vld [vmem:[#allocation5 + $0x20] sm:$0xff]  ;;  %p4177_p6 = scmp.ne.s32.totalorder %s3225_s10, %s4176_s11  ;;  %p4182_p8 = scmp.lt.s32.totalorder %s4176_s11, %s4176_s11 }
  0x3d   :  { %v251_v44 = vsub.f32 %v4313_v26, %v6031_v35  ;;  %141 = vmatprep.subr.mxu0 %v4287_v16  ;;  %v240_v48 = vand.u32 4294901760, %v239_v39  ;;  %v257_v49 = vsub.f32 %v4327_v32, %v6029_v40  ;;  %v6026_v50 = vand.u32 4294901760, %v4349_v41  ;;  %v4497_v35 = vld [vmem:[#allocation5 + $0x28] sm:$0xff] }
  0x3e   :  { %6209 = vst [vmem:[#allocation18_spill] sm:$0xff] %v4352_v42  ;;  %v4373_v51 = vand.u32 4294901760, %v4341_v38  ;;  %143 = vmatpush1.msra.mxu0 %v4289_v17  ;;  %v246_v53 = vand.u32 4294901760, %v245_v43  ;;  %v263_v55 = vsub.f32 %v4336_v36, %v6028_v45  ;;  %v6024_v56 = vand.u32 4294901760, %v4363_v46  ;;  %v4484_v45 = vld [vmem:[#allocation5 + $0x30] sm:$0xff]  ;;  %p4183_p9 = por %p4182_p8, %p4181_p7 }
  0x3f   :  { %v252_v54 = vand.u32 4294901760, %v251_v44  ;;  %145 = vmatprep.subr.mxu0 %v4291_v18  ;;  %241 = vmatprep.subr.mxu1 %v240_v48  ;;  %v258_v58 = vand.u32 4294901760, %v257_v49  ;;  %v269_v59 = vsub.f32 %v4349_v41, %v6026_v50  ;;  %v4389_v60 = vsub.f32 %v108_v14, %v4289_v17 }
  0x40   :  { %6210 = vst [vmem:[#allocation19_spill] sm:$0xff] %v4373_v51  ;;  %v4392_v61 = vand.u32 4294901760, %v4365_v47  ;;  %147 = vmatpush1.msra.mxu0 %v4304_v23  ;;  %247 = vmatpush1.msra.mxu1 %v246_v53  ;;  %v264_v63 = vand.u32 4294901760, %v263_v55  ;;  %v275_v1 = vsub.f32 %v4363_v46, %v6024_v56  ;;  %v4401_v2 = vsub.f32 %v107_v15, %v4291_v18  ;;  %v4417_v15 = vld [vmem:[#allocation5 + $0x50] sm:$0xff]  ;;  %p4184_p10 = pnand %p4183_p9, %p4177_p6 }
  0x41   :  { %v4404_v3 = vand.u32 4294901760, %v4375_v52  ;;  %149 = vmatprep.subr.mxu0 %v4310_v25  ;;  %253 = vmatprep.subr.mxu1 %v252_v54  ;;  %v270_v8 = vand.u32 4294901760, %v269_v59  ;;  %v6023_v9 = vand.u32 4294901760, %v4389_v60  ;;  %v4412_v13 = vsub.f32 %v4296_v20, %v4304_v23 }
  0x42   :  { %6211 = vst [vmem:[#allocation20_spill] sm:$0xff] %v4392_v61  ;;  %v4415_v14 = vand.u32 4294901760, %v4382_v57  ;;  %151 = vmatpush1.msra.mxu0 %v4324_v31  ;;  %259 = vmatpush1.msra.mxu1 %v258_v58  ;;  %v276_v39 = vand.u32 4294901760, %v275_v1  ;;  %v6022_v43 = vand.u32 4294901760, %v4401_v2  ;;  %v4423_v44 = vsub.f32 %v4298_v21, %v4310_v25  ;;  %v4440_v21 = vld [vmem:[#allocation5 + $0x48] sm:$0xff] }
  0x43   :  { %6212 = vst [vmem:[#allocation21_spill] sm:$0xff] %v4404_v3  ;;  %v4426_v48 = vand.u32 4294901760, %v4394_v62  ;;  %153 = vmatprep.subr.mxu0 %v4330_v33  ;;  %265 = vmatprep.subr.mxu1 %v264_v63  ;;  %v281_v20 = vsub.f32 %v4389_v60, %v6023_v9  ;;  %v6025_v49 = vand.u32 4294901760, %v4412_v13  ;;  %v4435_v53 = vsub.f32 %v4300_v22, %v4324_v31  ;;  %v4463_v9 = vld [vmem:[#allocation5 + $0x40] sm:$0xff] }
  0x44   :  { %6213 = vst [vmem:[#allocation22_spill] sm:$0xff] %v4415_v14  ;;  %v4438_v54 = vand.u32 4294901760, %v4406_v7  ;;  %155 = vmatpush1.msra.mxu0 %v4339_v37  ;;  %271 = vmatpush1.msra.mxu1 %v270_v8  ;;  %v287_v55 = vsub.f32 %v4401_v2, %v6022_v43  ;;  %v6027_v58 = vand.u32 4294901760, %v4423_v44  ;;  %v4449_v59 = vsub.f32 %v4315_v27, %v4330_v33  ;;  %v83_v33 = vld [vmem:[#allocation2] sm:$0xf] }
  0x45   :  { %6214 = vst [vmem:[#allocation23_spill] sm:$0xff] %v4426_v48  ;;  %v4452_v22 = vand.u32 4294901760, %v4417_v15  ;;  %157 = vmatprep.subr.mxu0 %v4352_v42  ;;  %277 = vmatprep.subr.mxu1 %v276_v39  ;;  %v282_v63 = vand.u32 4294901760, %v281_v20  ;;  %v293_v1 = vsub.f32 %v4412_v13, %v6025_v49  ;;  %v6030_v8 = vand.u32 4294901760, %v4435_v53  ;;  %v4473_v49 = vld [vmem:[#allocation5 + $0x38] sm:$0xff] }
  0x46   :  { %6215 = vst [vmem:[#allocation24_spill] sm:$0xff] %v4438_v54  ;;  %v4461_v43 = vsub.f32 %v4317_v28, %v4339_v37  ;;  %159 = vmatpush1.msra.mxu0 %v4373_v51  ;;  %v288_v27 = vand.u32 4294901760, %v287_v55  ;;  %v299_v39 = vsub.f32 %v4423_v44, %v6027_v58  ;;  %v6032_v20 = vand.u32 4294901760, %v4449_v59 }
  0x47   :  { %6216 = vst [vmem:[#allocation25_spill] sm:$0xff] %v4452_v22  ;;  %v4471_v56 = vand.u32 4294901760, %v4440_v21  ;;  %283 = vmatpush1.msra.mxu1 %v282_v63  ;;  %161 = vmatprep.subr.mxu0 %v4392_v61  ;;  %v294_v28 = vand.u32 4294901760, %v293_v1  ;;  %v305_v50 = vsub.f32 %v4435_v53, %v6030_v8  ;;  %v4482_v58 = vsub.f32 %v4319_v29, %v4352_v42 }
  0x48   :  { %v6035_v55 = vand.u32 4294901760, %v4461_v43  ;;  %289 = vmatprep.subr.mxu1 %v288_v27  ;;  %163 = vmatpush1.msra.mxu0 %v4404_v3  ;;  %v300_v40 = vand.u32 4294901760, %v299_v39  ;;  %v311_v63 = vsub.f32 %v4449_v59, %v6032_v20  ;;  %v4491_v1 = vand.u32 4294901760, %v4463_v9 }
  0x49   :  { %6217 = vst [vmem:[#allocation26_spill] sm:$0xff] %v4471_v56  ;;  %v4495_v8 = vsub.f32 %v4341_v38, %v4373_v51  ;;  %295 = vmatpush1.msra.mxu1 %v294_v28  ;;  %165 = vmatprep.subr.mxu0 %v4415_v14  ;;  %v306_v29 = vand.u32 4294901760, %v305_v50  ;;  %v6040_v39 = vand.u32 4294901760, %v4482_v58  ;;  %v4505_v20 = vand.u32 4294901760, %v4473_v49 }
  0x4a   :  { %6218 = vst [vmem:[#allocation27_spill] sm:$0xff] %v4491_v1  ;;  %v317_v27 = vsub.f32 %v4461_v43, %v6035_v55  ;;  %301 = vmatprep.subr.mxu1 %v300_v40  ;;  %167 = vmatpush1.msra.mxu0 %v4426_v48  ;;  %v312_v38 = vand.u32 4294901760, %v311_v63  ;;  %v4513_v50 = vsub.f32 %v4365_v47, %v4392_v61  ;;  %v4516_v30 = vand.u32 4294901760, %v4484_v45  ;;  %v4518_v55 = vld [vmem:[#allocation5 + $0x18] sm:$0xff] }
  0x4b   :  { %v6043_v28 = vand.u32 4294901760, %v4495_v8  ;;  %307 = vmatpush1.msra.mxu1 %v306_v29  ;;  %169 = vmatprep.subr.mxu0 %v4438_v54  ;;  %v323_v40 = vsub.f32 %v4482_v58, %v6040_v39  ;;  %v4526_v63 = vsub.f32 %v4375_v52, %v4404_v3  ;;  %v4529_v47 = vand.u32 4294901760, %v4497_v35  ;;  %v4543_v52 = vld [vmem:[#allocation5 + $0x10] sm:$0xff] }
  0x4c   :  { %6219 = vst [vmem:[#allocation28_spill] sm:$0xff] %v4516_v30  ;;  %v318_v0 = vand.u32 4294901760, %v317_v27  ;;  %313 = vmatprep.subr.mxu1 %v312_v38  ;;  %171 = vmatpush1.msra.mxu0 %v4452_v22  ;;  %v4538_v61 = vsub.f32 %v4382_v57, %v4415_v14  ;;  %v4541_v39 = vand.u32 4294901760, %v4507_v34  ;;  %v4552_v27 = vand.u32 4294901760, %v4518_v55  ;;  %v4554_v57 = vld [vmem:[#allocation5 + $0x8] sm:$0xff] }
  0x4d   :  { %6220 = vst [vmem:[#allocation29_spill] sm:$0xff] %v4529_v47  ;;  %v329_v29 = vsub.f32 %v4495_v8, %v6043_v28  ;;  %173 = vmatprep.subr.mxu0 %v4471_v56  ;;  %v324_v38 = vand.u32 4294901760, %v323_v40  ;;  %v4549_v28 = vsub.f32 %v4394_v62, %v4426_v48  ;;  %v6222_v51 = vand.u32 4294901760, %v4513_v50  ;;  %v4577_v40 = vld [vmem:[#allocation5] sm:$0xff] }
  0x4e   :  { %6221 = vst [vmem:[#allocation30_spill] sm:$0xff] %v4541_v39  ;;  %319 = vmatpush1.msra.mxu1 %v318_v0  ;;  %175 = vmatpush1.msra.mxu0 %v4491_v1  ;;  %v4563_v3 = vsub.f32 %v4406_v7, %v4438_v54  ;;  %v6223_v62 = vand.u32 4294901760, %v4526_v63  ;;  %v4585_v42 = vand.u32 4294901760, %v4554_v57  ;;  %v4601_v31 = vand.u32 4294901760, %v4577_v40 }
  0x4f   :  { %v330_v14 = vand.u32 4294901760, %v329_v29  ;;  %v335_v0 = vsub.f32 %v4513_v50, %v6222_v51  ;;  %325 = vmatprep.subr.mxu1 %v324_v38  ;;  %177 = vmatprep.subr.mxu0 %v4505_v20  ;;  %v4571_v29 = vand.u32 4294901760, %v4543_v52  ;;  %v4575_v51 = vsub.f32 %v4417_v15, %v4452_v22 }
  0x50   :  { %v341_v48 = vsub.f32 %v4526_v63, %v6223_v62  ;;  %179 = vmatpush1.msra.mxu0 %v4516_v30  ;;  %v6225_v38 = vand.u32 4294901760, %v4538_v61  ;;  %v6062_v62 = vand.u32 4294901760, %v4563_v3  ;;  %v6226_v15 = vand.u32 4294901760, %v4549_v28 }
  0x51   :  { %6224 = vst [vmem:[#allocation31_spill] sm:$0xff] %v4571_v29  ;;  %331 = vmatpush1.msra.mxu1 %v330_v14  ;;  %v336_v7 = vand.u32 4294901760, %v335_v0  ;;  %181 = vmatprep.subr.mxu0 %v4529_v47  ;;  %v4594_v0 = vsub.f32 %v4440_v21, %v4471_v56  ;;  %v6227_v21 = vand.u32 4294901760, %v4575_v51 }
  0x52   :  { %v347_v54 = vsub.f32 %v4538_v61, %v6225_v38  ;;  %v342_v37 = vand.u32 4294901760, %v341_v48  ;;  %v353_v22 = vsub.f32 %v4549_v28, %v6226_v15  ;;  %183 = vmatpush1.msra.mxu0 %v4541_v39  ;;  %v359_v48 = vsub.f32 %v4563_v3, %v6062_v62 }
  0x53   :  { %337 = vmatprep.subr.mxu1 %v336_v7  ;;  %v4605_v15 = vsub.f32 %v4463_v9, %v4491_v1  ;;  %185 = vmatprep.subr.mxu0 %v4552_v27  ;;  %v6065_v7 = vand.u32 4294901760, %v4594_v0  ;;  %v4614_v62 = vsub.f32 %v4473_v49, %v4505_v20 }
  0x54   :  { %v348_v38 = vand.u32 4294901760, %v347_v54  ;;  %343 = vmatpush1.msra.mxu1 %v342_v37  ;;  %v354_v14 = vand.u32 4294901760, %v353_v22  ;;  %v365_v54 = vsub.f32 %v4575_v51, %v6227_v21  ;;  %v360_v56 = vand.u32 4294901760, %v359_v48  ;;  %187 = vmatpush1.msra.mxu0 %v4571_v29 }
  0x55   :  { %v6068_v9 = vand.u32 4294901760, %v4605_v15  ;;  %v4618_v37 = vand.u32 4294901760, %v83_v33  ;;  %v4622_v22 = vsub.f32 %v4484_v45, %v4516_v30  ;;  %189 = vmatprep.subr.mxu0 %v4585_v42  ;;  %v371_v49 = vsub.f32 %v4594_v0, %v6065_v7 }
  0x56   :  { %349 = vmatprep.subr.mxu1 %v348_v38  ;;  %v366_v21 = vand.u32 4294901760, %v365_v54  ;;  %v4631_v48 = vsub.f32 %v4497_v35, %v4529_v47  ;;  %191 = vmatpush1.msra.mxu0 %v4601_v31  ;;  %v4643_v7 = vsub.f32 %v4507_v34, %v4541_v39  ;;  %v6229_v35 = vand.u32 4294901760, %v4614_v62 }
  0x57   :  { %6228 = vst [vmem:[#allocation32_spill] sm:$0xff] %v4618_v37  ;;  %355 = vmatpush1.msra.mxu1 %v354_v14  ;;  %v377_v45 = vsub.f32 %v4605_v15, %v6068_v9  ;;  %v4638_v14 = vsub.f32 %v83_v33, %v4618_v37  ;;  %v372_v38 = vand.u32 4294901760, %v371_v49  ;;  %470 = vmatprep.subr.mxu0 %v4294_v19  ;;  %v6230_v34 = vand.u32 4294901760, %v4622_v22 }
  0x58   :  { %361 = vmatprep.subr.mxu1 %v360_v56  ;;  %v383_v56 = vsub.f32 %v4614_v62, %v6229_v35  ;;  %v6073_v47 = vand.u32 4294901760, %v4631_v48  ;;  %v4652_v33 = vsub.f32 %v4518_v55, %v4552_v27  ;;  %v6077_v49 = vand.u32 4294901760, %v4643_v7 }
  0x59   :  { %367 = vmatpush1.msra.mxu1 %v366_v21  ;;  %v378_v9 = vand.u32 4294901760, %v377_v45  ;;  %v6074_v54 = vand.u32 4294901760, %v4638_v14  ;;  %v389_v21 = vsub.f32 %v4622_v22, %v6230_v34  ;;  %v4665_v55 = vsub.f32 %v4543_v52, %v4571_v29 }
  0x5a   :  { %373 = vmatprep.subr.mxu1 %v372_v38  ;;  %v384_v39 = vand.u32 4294901760, %v383_v56  ;;  %v395_v35 = vsub.f32 %v4631_v48, %v6073_v47  ;;  %v6081_v30 = vand.u32 4294901760, %v4652_v33  ;;  %v401_v38 = vsub.f32 %v4643_v7, %v6077_v49 }
  0x5b   :  { %6231 = vst [vmem:[#allocation33_spill] sm:$0xff] %v4665_v55  ;;  %379 = vmatpush1.msra.mxu1 %v378_v9  ;;  %v228_v45 = vsub.f32 %v4638_v14, %v6074_v54  ;;  %v390_v34 = vand.u32 4294901760, %v389_v21  ;;  %v4675_v56 = vsub.f32 %v4554_v57, %v4585_v42  ;;  %v6080_v9 = vand.u32 4294901760, %v4665_v55 }
  0x5c   :  { %385 = vmatprep.subr.mxu1 %v384_v39  ;;  %v396_v47 = vand.u32 4294901760, %v395_v35  ;;  %v407_v52 = vsub.f32 %v4652_v33, %v6081_v30  ;;  %v4683_v54 = vsub.f32 %v4577_v40, %v4601_v31  ;;  %v402_v29 = vand.u32 4294901760, %v401_v38 }
  0x5d   :  { %v229_v21 = vand.u32 4294901760, %v228_v45  ;;  %391 = vmatpush1.msra.mxu1 %v390_v34  ;;  %v6079_v49 = vand.u32 4294901760, %v4675_v56  ;;  %v413_v39 = vsub.f32 %v4665_v55, %v6080_v9  ;;  %v6233_v38 = vmov 0.0   ;;  %v6245_v9 = vld [vmem:[#allocation26_spill] sm:$0xff] }
  0x5e   :  { %6232 = vst [vmem:[#allocation34_spill] sm:$0xff] %v4683_v54  ;;  %397 = vmatprep.subr.mxu1 %v396_v47  ;;  %v408_v57 = vand.u32 4294901760, %v407_v52  ;;  %v6078_v35 = vand.u32 4294901760, %v4683_v54  ;;  %v6234_v52 = vld [vmem:[#allocation15_spill] sm:$0xff]  ;;  %v6246_v30 = vand.u32 4294901760, %v4294_v19  ;;  %v6253_v19 = vand.u32 4294901760, %v4336_v36 }
  0x5f   :  { %230 = vmatmul.mubr.f32.vlgmr.msra.gmra.mxu0 %v229_v21  ;;  %403 = vmatpush1.msra.mxu1 %v402_v29  ;;  %v419_v40 = vsub.f32 %v4675_v56, %v6079_v49  ;;  %v414_v45 = vand.u32 4294901760, %v413_v39  ;;  %v6235_v21 = vld [vmem:[#allocation16_spill] sm:$0xff]  ;;  %v6237_v39 = vld [vmem:[#allocation18_spill] sm:$0xff]  ;;  %v6244_v49 = vld [vmem:[#allocation25_spill] sm:$0xff] }
  0x60   :  { %473 = vmatpush1.msra.mxu0 %v4307_v24  ;;  %409 = vmatprep.subr.mxu1 %v408_v57  ;;  %v425_v47 = vsub.f32 %v4683_v54, %v6078_v35  ;;  %v6236_v57 = vld [vmem:[#allocation17_spill] sm:$0xff]  ;;  %v6243_v35 = vld [vmem:[#allocation24_spill] sm:$0xff] }
  0x61   :  { %476 = vmatprep.subr.mxu0 %v4313_v26  ;;  %v420_v34 = vand.u32 4294901760, %v419_v40  ;;  %596 = vmatprep.mubr.f32.mxu0 %v6233_v38  ;;  %v6238_v40 = vld [vmem:[#allocation19_spill] sm:$0xff] }
  0x62   :  { %479 = vmatpush1.msra.mxu0 %v4327_v32  ;;  %415 = vmatpush1.msra.mxu1 %v414_v45  ;;  %v426_v29 = vand.u32 4294901760, %v425_v47  ;;  %v6239_v45 = vld [vmem:[#allocation20_spill] sm:$0xff]  ;;  %v6240_v47 = vld [vmem:[#allocation21_spill] sm:$0xff] }
  0x63   :  { %482 = vmatprep.subr.mxu0 %v4336_v36  ;;  %421 = vmatprep.subr.mxu1 %v420_v34  ;;  %v6241_v34 = vld [vmem:[#allocation22_spill] sm:$0xff]  ;;  %v6258_v36 = vand.u32 4294901760, %v4638_v14 }
  0x64   :  { %485 = vmatpush1.msra.mxu0 %v4349_v41  ;;  %427 = vmatpush1.msra.mxu1 %v426_v29  ;;  %v6242_v29 = vld [vmem:[#allocation23_spill] sm:$0xff] }
  0x65   :  { %488 = vmatprep.subr.mxu0 %v4363_v46  ;;  %462 = vmatmul.mubr.f32.vlgmr.msra.gmra.mxu1 %v4618_v37  ;;  %v6247_v37 = vld [vmem:[#allocation28_spill] sm:$0xff] }
  0x66   :  { %491 = vmatpush1.msra.mxu0 %v4389_v60  ;;  %606 = vmatprep.subr.mxu1 %v4274_v4 }
  0x67   :  { %494 = vmatprep.subr.mxu0 %v4401_v2  ;;  %608 = vmatpush1.msra.mxu1 %v4276_v5 }
  0x68   :  { %497 = vmatpush1.msra.mxu0 %v4412_v13  ;;  %610 = vmatprep.subr.mxu1 %v4278_v6 }
  0x69   :  { %500 = vmatprep.subr.mxu0 %v4423_v44  ;;  %612 = vmatpush1.msra.mxu1 %v4280_v10 }
  0x6a   :  { %503 = vmatpush1.msra.mxu0 %v4435_v53  ;;  %614 = vmatprep.subr.mxu1 %v4282_v11 }
  0x6b   :  { %506 = vmatprep.subr.mxu0 %v4449_v59  ;;  %616 = vmatpush1.msra.mxu1 %v4284_v12 }
  0x6c   :  { %509 = vmatpush1.msra.mxu0 %v4461_v43  ;;  %618 = vmatprep.subr.mxu1 %v4287_v16 }
  0x6d   :  { %512 = vmatprep.subr.mxu0 %v4482_v58  ;;  %620 = vmatpush1.msra.mxu1 %v4289_v17 }
  0x6e   :  { %515 = vmatpush1.msra.mxu0 %v4495_v8  ;;  %622 = vmatprep.subr.mxu1 %v4291_v18 }
  0x6f   :  { %518 = vmatprep.subr.mxu0 %v4513_v50  ;;  %624 = vmatpush1.msra.mxu1 %v4304_v23 }
  0x70   :  { %521 = vmatpush1.msra.mxu0 %v4526_v63  ;;  %626 = vmatprep.subr.mxu1 %v4310_v25 }
  0x71   :  { %524 = vmatprep.subr.mxu0 %v4538_v61  ;;  %628 = vmatpush1.msra.mxu1 %v6234_v52 }
  0x72   :  { %527 = vmatpush1.msra.mxu0 %v4549_v28  ;;  %630 = vmatprep.subr.mxu1 %v6235_v21 }
  0x73   :  { %530 = vmatprep.subr.mxu0 %v4563_v3  ;;  %632 = vmatpush1.msra.mxu1 %v6236_v57 }
  0x74   :  { %533 = vmatpush1.msra.mxu0 %v4575_v51  ;;  %634 = vmatprep.subr.mxu1 %v6237_v39 }
  0x75   :  { %536 = vmatprep.subr.mxu0 %v4594_v0  ;;  %636 = vmatpush1.msra.mxu1 %v6238_v40 }
  0x76   :  { %539 = vmatpush1.msra.mxu0 %v4605_v15  ;;  %638 = vmatprep.subr.mxu1 %v6239_v45 }
  0x77   :  { %542 = vmatprep.subr.mxu0 %v4614_v62  ;;  %640 = vmatpush1.msra.mxu1 %v6240_v47 }
  0x78   :  { %545 = vmatpush1.msra.mxu0 %v4622_v22  ;;  %642 = vmatprep.subr.mxu1 %v6241_v34 }
  0x79   :  { %548 = vmatprep.subr.mxu0 %v4631_v48  ;;  %644 = vmatpush1.msra.mxu1 %v6242_v29 }
  0x7a   :  { %551 = vmatpush1.msra.mxu0 %v4643_v7  ;;  %646 = vmatprep.subr.mxu1 %v6243_v35 }
  0x7b   :  { %554 = vmatprep.subr.mxu0 %v4652_v33  ;;  %648 = vmatpush1.msra.mxu1 %v6244_v49  ;;  %v6248_v49 = vand.u32 4294901760, %v4307_v24  ;;  %v6255_v24 = vand.u32 4294901760, %v4349_v41  ;;  %v6260_v41 = vand.u32 4294901760, %v4412_v13  ;;  %v6277_v13 = vand.u32 4294901760, %v4631_v48  ;;  %v1026_v48 = vld [vmem:[#allocation7 + $0xe8] sm:$0xff] }
  0x7c   :  { %557 = vmatpush1.msra.mxu0 %v4665_v55  ;;  %650 = vmatprep.subr.mxu1 %v6245_v9  ;;  %v6249_v55 = vld [vmem:[#allocation29_spill] sm:$0xff]  ;;  %v6250_v9 = vand.u32 4294901760, %v4313_v26  ;;  %v6256_v26 = vand.u32 4294901760, %v4363_v46  ;;  %v6261_v46 = vand.u32 4294901760, %v4423_v44  ;;  %v6279_v44 = vand.u32 4294901760, %v4652_v33 }
  0x7d   :  { %560 = vmatprep.subr.mxu0 %v4675_v56  ;;  %652 = vmatpush1.msra.mxu1 %v4491_v1  ;;  %v6251_v1 = vld [vmem:[#allocation30_spill] sm:$0xff] }
  0x7e   :  { %563 = vmatpush1.msra.mxu0 %v4683_v54  ;;  %654 = vmatprep.subr.mxu1 %v4505_v20  ;;  %v6252_v54 = vand.u32 4294901760, %v4327_v32  ;;  %v6257_v32 = vand.u32 4294901760, %v4389_v60  ;;  %v6262_v60 = vand.u32 4294901760, %v4435_v53  ;;  %v6280_v53 = vld [vmem:[#allocation33_spill] sm:$0xff] }
  0x7f   :  { %599 = vmatmul.mubr.f32.vlgmr.msra.gmra.mxu0 %v4638_v14  ;;  %714 = vmatprep.subr.mxu0 %v6246_v30  ;;  %v6254_v30 = vld [vmem:[#allocation31_spill] sm:$0xff] }
  0x80   :  { %656 = vmatpush1.msra.mxu1 %v6247_v37  ;;  %718 = vmatpush1.msra.mxu0 %v6248_v49  ;;  %v4885_v49 = vand.u32 4294901760, %v1026_v48 }
  0x81   :  { %658 = vmatprep.subr.mxu1 %v6249_v55  ;;  %722 = vmatprep.subr.mxu0 %v6250_v9 }
  0x82   :  { %660 = vmatpush1.msra.mxu1 %v6251_v1  ;;  %726 = vmatpush1.msra.mxu0 %v6252_v54  ;;  %v6259_v54 = vand.u32 4294901760, %v4401_v2  ;;  %v6263_v2 = vand.u32 4294901760, %v4449_v59  ;;  %v6282_v59 = vld [vmem:[#allocation25_spill] sm:$0xff] }
  0x83   :  { %662 = vmatprep.subr.mxu1 %v4552_v27  ;;  %730 = vmatprep.subr.mxu0 %v6253_v19 }
  0x84   :  { %664 = vmatpush1.msra.mxu1 %v6254_v30  ;;  %734 = vmatpush1.msra.mxu0 %v6255_v24 }
  0x85   :  { %666 = vmatprep.subr.mxu1 %v4585_v42  ;;  %738 = vmatprep.subr.mxu0 %v6256_v26 }
  0x86   :  { %668 = vmatpush1.msra.mxu1 %v4601_v31  ;;  %701 = vmatprep.mubr.f32.mxu1 %v6233_v38 }
  0x87   :  { %742 = vmatpush1.msra.mxu0 %v6257_v32  ;;  %705 = vmatmul.mubr.f32.vlgmr.msra.gmra.mxu1 %v6258_v36 }
  0x88   :  { %746 = vmatprep.subr.mxu0 %v6259_v54  ;;  %880 = vmatprep.subr.mxu1 %v4274_v4  ;;  %v6264_v4 = vand.u32 4294901760, %v4461_v43  ;;  %v6278_v43 = vand.u32 4294901760, %v4643_v7  ;;  %v1008_v54 = vld [vmem:[#allocation7 + $0x58] sm:$0xff] }
  0x89   :  { %750 = vmatpush1.msra.mxu0 %v6260_v41  ;;  %882 = vmatpush1.msra.mxu1 %v4276_v5  ;;  %v6265_v5 = vand.u32 4294901760, %v4482_v58  ;;  %v6281_v58 = vand.u32 4294901760, %v6280_v53 }
  0x8a   :  { %754 = vmatprep.subr.mxu0 %v6261_v46  ;;  %884 = vmatprep.subr.mxu1 %v4278_v6  ;;  %v6266_v6 = vand.u32 4294901760, %v4495_v8  ;;  %v6283_v8 = vand.u32 4294901760, %v4675_v56 }
  0x8b   :  { %758 = vmatpush1.msra.mxu0 %v6262_v60  ;;  %886 = vmatpush1.msra.mxu1 %v4280_v10  ;;  %v6267_v10 = vand.u32 4294901760, %v4513_v50  ;;  %v6285_v50 = vld [vmem:[#allocation34_spill] sm:$0xff] }
  0x8c   :  { %762 = vmatprep.subr.mxu0 %v6263_v2  ;;  %888 = vmatprep.subr.mxu1 %v4282_v11  ;;  %v6268_v11 = vand.u32 4294901760, %v4526_v63  ;;  %v6286_v63 = vand.u32 4294901760, %v6285_v50 }
  0x8d   :  { %766 = vmatpush1.msra.mxu0 %v6264_v4  ;;  %890 = vmatpush1.msra.mxu1 %v4284_v12  ;;  %v6269_v12 = vand.u32 4294901760, %v4538_v61  ;;  %v6275_v61 = vand.u32 4294901760, %v4614_v62  ;;  %v6288_v62 = vld [vmem:[#allocation32_spill] sm:$0xff] }
  0x8e   :  { %770 = vmatprep.subr.mxu0 %v6265_v5  ;;  %892 = vmatprep.subr.mxu1 %v4287_v16  ;;  %v6270_v16 = vand.u32 4294901760, %v4549_v28  ;;  %v6284_v28 = vld [vmem:[#allocation26_spill] sm:$0xff]  ;;  %v1023_v4 = vld [vmem:[#allocation7 + $0xd0] sm:$0xff] }
  0x8f   :  { %774 = vmatpush1.msra.mxu0 %v6266_v6  ;;  %894 = vmatpush1.msra.mxu1 %v4289_v17  ;;  %v6271_v17 = vand.u32 4294901760, %v4563_v3  ;;  %v6276_v3 = vand.u32 4294901760, %v4622_v22 }
  0x90   :  { %778 = vmatprep.subr.mxu0 %v6267_v10  ;;  %896 = vmatprep.subr.mxu1 %v4291_v18  ;;  %v6272_v18 = vand.u32 4294901760, %v4575_v51  ;;  %v6287_v51 = vld [vmem:[#allocation27_spill] sm:$0xff] }
  0x91   :  { %782 = vmatpush1.msra.mxu0 %v6268_v11  ;;  %898 = vmatpush1.msra.mxu1 %v4304_v23  ;;  %v6273_v23 = vand.u32 4294901760, %v4594_v0  ;;  %v1028_v0 = vld [vmem:[#allocation7 + $0xf8] sm:$0xff] }
  0x92   :  { %786 = vmatprep.subr.mxu0 %v6269_v12  ;;  %900 = vmatprep.subr.mxu1 %v4310_v25  ;;  %v6274_v25 = vand.u32 4294901760, %v4605_v15  ;;  %v1012_v15 = vld [vmem:[#allocation7 + $0x78] sm:$0xff]  ;;  %v1007_v12 = vld [vmem:[#allocation7 + $0x50] sm:$0xff] }
  0x93   :  { %790 = vmatpush1.msra.mxu0 %v6270_v16  ;;  %902 = vmatpush1.msra.mxu1 %v6234_v52  ;;  %v4867_v7 = vand.u32 4294901760, %v1012_v15  ;;  %v1025_v52 = vld [vmem:[#allocation7 + $0xe0] sm:$0xff] }
  0x94   :  { %794 = vmatprep.subr.mxu0 %v6271_v17  ;;  %904 = vmatprep.subr.mxu1 %v6235_v21 }
  0x95   :  { %798 = vmatpush1.msra.mxu0 %v6272_v18  ;;  %906 = vmatpush1.msra.mxu1 %v6236_v57 }
  0x96   :  { %802 = vmatprep.subr.mxu0 %v6273_v23  ;;  %908 = vmatprep.subr.mxu1 %v6237_v39  ;;  %v4900_v39 = vsub.f32 %v1026_v48, %v4885_v49  ;;  %v4941_v23 = vand.u32 4294901760, %v1008_v54 }
  0x97   :  { %806 = vmatpush1.msra.mxu0 %v6274_v25  ;;  %910 = vmatpush1.msra.mxu1 %v6238_v40  ;;  %v4902_v40 = vand.u32 4294901760, %v1025_v52  ;;  %v1022_v25 = vld [vmem:[#allocation7 + $0xc8] sm:$0xff] }
  0x98   :  { %810 = vmatprep.subr.mxu0 %v6275_v61  ;;  %912 = vmatprep.subr.mxu1 %v6239_v45  ;;  %v1009_v45 = vld [vmem:[#allocation7 + $0x60] sm:$0xff]  ;;  %v6099_v32 = vand.u32 4294901760, %v4900_v39 }
  0x99   :  { %814 = vmatpush1.msra.mxu0 %v6276_v3  ;;  %914 = vmatpush1.msra.mxu1 %v6240_v47  ;;  %v4912_v19 = vand.u32 4294901760, %v1009_v45  ;;  %v4920_v36 = vsub.f32 %v1025_v52, %v4902_v40 }
  0x9a   :  { %818 = vmatprep.subr.mxu0 %v6277_v13  ;;  %916 = vmatprep.subr.mxu1 %v6241_v34  ;;  %v1278_v6 = vsub.f32 %v4900_v39, %v6099_v32 }
  0x9b   :  { %822 = vmatpush1.msra.mxu0 %v6278_v43  ;;  %918 = vmatpush1.msra.mxu1 %v6242_v29  ;;  %v4928_v2 = vsub.f32 %v1009_v45, %v4912_v19  ;;  %v6097_v10 = vand.u32 4294901760, %v4920_v36  ;;  %v4949_v43 = vand.u32 4294901760, %v1023_v4 }
  0x9c   :  { %826 = vmatprep.subr.mxu0 %v6279_v44  ;;  %920 = vmatprep.subr.mxu1 %v6243_v35  ;;  %v1279_v61 = vand.u32 4294901760, %v1278_v6  ;;  %v1006_v44 = vld [vmem:[#allocation7 + $0x48] sm:$0xff]  ;;  %v1004_v6 = vld [vmem:[#allocation7 + $0x38] sm:$0xff] }
  0x9d   :  { %830 = vmatpush1.msra.mxu0 %v6281_v58  ;;  %922 = vmatpush1.msra.mxu1 %v6282_v59  ;;  %v6095_v18 = vand.u32 4294901760, %v4928_v2  ;;  %v1285_v3 = vsub.f32 %v4920_v36, %v6097_v10  ;;  %v4956_v59 = vsub.f32 %v1008_v54, %v4941_v23  ;;  %v4972_v48 = vand.u32 4294901760, %v1006_v44  ;;  %v1020_v54 = vld [vmem:[#allocation7 + $0xb8] sm:$0xff] }
  0x9e   :  { %834 = vmatprep.subr.mxu0 %v6283_v8  ;;  %924 = vmatprep.subr.mxu1 %v6284_v28  ;;  %v4958_v8 = vand.u32 4294901760, %v1007_v12  ;;  %v1021_v28 = vld [vmem:[#allocation7 + $0xc0] sm:$0xff]  ;;  %v1016_v10 = vld [vmem:[#allocation7 + $0x98] sm:$0xff] }
  0x9f   :  { %838 = vmatpush1.msra.mxu0 %v6286_v63  ;;  %871 = vmatprep.mubr.f32.mxu0 %v6233_v38  ;;  %v1173_v58 = vsub.f32 %v4928_v2, %v6095_v18  ;;  %v1286_v50 = vand.u32 4294901760, %v1285_v3  ;;  %v4982_v45 = vand.u32 4294901760, %v1021_v28 }
  0xa0   :  { %926 = vmatpush1.msra.mxu1 %v6287_v51  ;;  %873 = vmatmul.mubr.f32.vlgmr.msra.gmra.mxu0 %v6288_v62  ;;  %v4963_v51 = vsub.f32 %v1023_v4, %v4949_v43 }
  0xa1   :  { %928 = vmatprep.subr.mxu1 %v4505_v20  ;;  %975 = vmatprep.mubr.f32.mxu1 %v6233_v38  ;;  %v4865_v20 = vand.u32 4294901760, %v1028_v0  ;;  %v999_v38 = vld [vmem:[#allocation7 + $0x10] sm:$0xff] }
  0xa2   :  { %930 = vmatpush1.msra.mxu1 %v6247_v37  ;;  %v1027_v37 = vld [vmem:[#allocation7 + $0xf0] sm:$0xff]  ;;  %v6091_v52 = vand.u32 4294901760, %v4963_v51 }
  0xa3   :  { %932 = vmatprep.subr.mxu1 %v6249_v55  ;;  %6289 = vst [vmem:[#allocation15_spill] sm:$0xff] %v4865_v20  ;;  %v4870_v22 = vsub.f32 %v1028_v0, %v4865_v20  ;;  %3240 = vmatprep.subr.mxu0 %v4865_v20  ;;  %v1010_v55 = vld [vmem:[#allocation7 + $0x68] sm:$0xff]  ;;  %v1005_v0 = vld [vmem:[#allocation7 + $0x40] sm:$0xff] }
  0xa4   :  { %934 = vmatpush1.msra.mxu1 %v6251_v1  ;;  %v4872_v1 = vand.u32 4294901760, %v1027_v37  ;;  %3241 = vmatpush3.msra.mxu0 %v4867_v7  ;;  %v4892_v35 = vand.u32 4294901760, %v1010_v55 }
  0xa5   :  { %936 = vmatprep.subr.mxu1 %v4552_v27  ;;  %6290 = vst [vmem:[#allocation16_spill] sm:$0xff] %v4870_v22  ;;  %v1011_v27 = vld [vmem:[#allocation7 + $0x70] sm:$0xff]  ;;  %v6105_v14 = vand.u32 4294901760, %v4870_v22 }
  0xa6   :  { %938 = vmatpush1.msra.mxu1 %v6254_v30  ;;  %v4883_v33 = vsub.f32 %v1027_v37, %v4872_v1  ;;  %3242 = vmatprep.subr.mxu0 %v4872_v1  ;;  %v4910_v29 = vsub.f32 %v1010_v55, %v4892_v35  ;;  %v1024_v30 = vld [vmem:[#allocation7 + $0xd8] sm:$0xff]  ;;  %v6092_v37 = vand.u32 4294901760, %v4956_v59 }
  0xa7   :  { %940 = vmatprep.subr.mxu1 %v4585_v42  ;;  %v4876_v42 = vsub.f32 %v1012_v15, %v4867_v7  ;;  %v1264_v21 = vsub.f32 %v4870_v22, %v6105_v14  ;;  %v4935_v11 = vand.u32 4294901760, %v1024_v30  ;;  %v1174_v15 = vand.u32 4294901760, %v1173_v58 }
  0xa8   :  { %942 = vmatpush1.msra.mxu1 %v4601_v31  ;;  %v4878_v31 = vand.u32 4294901760, %v1011_v27  ;;  %v6102_v57 = vand.u32 4294901760, %v4883_v33  ;;  %v6098_v60 = vand.u32 4294901760, %v4910_v29  ;;  %v5015_v58 = vand.u32 4294901760, %v1020_v54 }
  0xa9   :  { %977 = vmatmul.mubr.f32.vlgmr.msra.gmra.mxu1 %v6288_v62  ;;  %v6103_v56 = vand.u32 4294901760, %v4876_v42  ;;  %v1265_v24 = vand.u32 4294901760, %v1264_v21  ;;  %v4947_v13 = vsub.f32 %v1024_v30, %v4935_v11  ;;  %v4965_v62 = vand.u32 4294901760, %v1022_v25 }
  0xaa   :  { %v4890_v9 = vsub.f32 %v1011_v27, %v4878_v31  ;;  %3243 = vmatpush3.msra.mxu0 %v4878_v31  ;;  %v1271_v26 = vsub.f32 %v4883_v33, %v6102_v57  ;;  %v1166_v17 = vsub.f32 %v4910_v29, %v6098_v60  ;;  %v4970_v27 = vsub.f32 %v1007_v12, %v4958_v8 }
  0xab   :  { %3244 = vmatprep.subr.mxu0 %v4885_v49  ;;  %v1152_v47 = vsub.f32 %v4876_v42, %v6103_v56  ;;  %3275 = vmatprep.subr.mxu1 %v1265_v24  ;;  %v6094_v63 = vand.u32 4294901760, %v4947_v13  ;;  %v4980_v21 = vsub.f32 %v1022_v25, %v4965_v62  ;;  %v4990_v24 = vsub.f32 %v1006_v44, %v4972_v48  ;;  %v1015_v56 = vld [vmem:[#allocation7 + $0x90] sm:$0xff] }
  0xac   :  { %v6101_v34 = vand.u32 4294901760, %v4890_v9  ;;  %3245 = vmatpush3.msra.mxu0 %v4892_v35  ;;  %v1272_v5 = vand.u32 4294901760, %v1271_v26  ;;  %v1167_v53 = vand.u32 4294901760, %v1166_v17  ;;  %v6089_v30 = vand.u32 4294901760, %v4970_v27 }
  0xad   :  { %3246 = vmatprep.subr.mxu0 %v4902_v40  ;;  %v1153_v41 = vand.u32 4294901760, %v1152_v47  ;;  %v1292_v55 = vsub.f32 %v4947_v13, %v6094_v63  ;;  %v1180_v47 = vsub.f32 %v4956_v59, %v6092_v37  ;;  %v4992_v26 = vand.u32 4294901760, %v1005_v0 }
  0xae   :  { %v1159_v46 = vsub.f32 %v4890_v9, %v6101_v34  ;;  %3247 = vmatpush3.msra.mxu0 %v4912_v19  ;;  %v6087_v4 = vand.u32 4294901760, %v4980_v21  ;;  %v6088_v17 = vand.u32 4294901760, %v4990_v24  ;;  %v5095_v14 = vand.u32 4294901760, %v1016_v10 }
  0xaf   :  { %3276 = vmatpush3.msra.mxu1 %v1153_v41  ;;  %3248 = vmatprep.subr.mxu0 %v4935_v11  ;;  %v1293_v41 = vand.u32 4294901760, %v1292_v55  ;;  %v1181_v12 = vand.u32 4294901760, %v1180_v47  ;;  %v5008_v25 = vsub.f32 %v1005_v0, %v4992_v26  ;;  %v5021_v55 = vand.u32 4294901760, %v1004_v6  ;;  %v1018_v47 = vld [vmem:[#allocation7 + $0xa8] sm:$0xff] }
  0xb0   :  { %v1160_v16 = vand.u32 4294901760, %v1159_v46  ;;  %3277 = vmatprep.subr.mxu1 %v1272_v5  ;;  %3249 = vmatpush3.msra.mxu0 %v4941_v23  ;;  %v1299_v46 = vsub.f32 %v4963_v51, %v6091_v52  ;;  %v5000_v5 = vsub.f32 %v1021_v28, %v4982_v45  ;;  %v1306_v44 = vsub.f32 %v4980_v21, %v6087_v4  ;;  %v1003_v28 = vld [vmem:[#allocation7 + $0x30] sm:$0xff] }
  0xb1   :  { %3250 = vmatprep.subr.mxu0 %v4949_v43  ;;  %v1194_v0 = vsub.f32 %v4990_v24, %v6088_v17  ;;  %v5027_v4 = vsub.f32 %v1020_v54, %v5015_v58  ;;  %6299 = vst [vmem:[#allocation28_spill] sm:$0xff] %v5095_v14 }
  0xb2   :  { %3278 = vmatpush3.msra.mxu1 %v1160_v16  ;;  %3251 = vmatpush3.msra.mxu0 %v4958_v8  ;;  %v1187_v16 = vsub.f32 %v4970_v27, %v6089_v30  ;;  %v1300_v3 = vand.u32 4294901760, %v1299_v46 }
  0xb3   :  { %3279 = vmatprep.subr.mxu1 %v1279_v61  ;;  %3252 = vmatprep.subr.mxu0 %v4965_v62  ;;  %v1019_v61 = vld [vmem:[#allocation7 + $0xb0] sm:$0xff]  ;;  %6291 = vst [vmem:[#allocation17_spill] sm:$0xff] %v5027_v4  ;;  %v1195_v17 = vand.u32 4294901760, %v1194_v0  ;;  %v6096_v52 = vand.u32 4294901760, %v5027_v4  ;;  %v1001_v0 = vld [vmem:[#allocation7 + $0x20] sm:$0xff] }
  0xb4   :  { %3280 = vmatpush3.msra.mxu1 %v1167_v53  ;;  %3253 = vmatpush3.msra.mxu0 %v4972_v48  ;;  %v6090_v53 = vand.u32 4294901760, %v5000_v5 }
  0xb5   :  { %3281 = vmatprep.subr.mxu1 %v1286_v50  ;;  %3254 = vmatprep.subr.mxu0 %v4982_v45  ;;  %v1188_v50 = vand.u32 4294901760, %v1187_v16  ;;  %v1002_v16 = vld [vmem:[#allocation7 + $0x28] sm:$0xff] }
  0xb6   :  { %3282 = vmatpush3.msra.mxu1 %v1174_v15  ;;  %3255 = vmatpush3.msra.mxu0 %v4992_v26  ;;  %v6093_v15 = vand.u32 4294901760, %v5008_v25  ;;  %v1313_v46 = vsub.f32 %v5000_v5, %v6090_v53  ;;  %v1017_v53 = vld [vmem:[#allocation7 + $0xa0] sm:$0xff]  ;;  %v5052_v18 = vand.u32 4294901760, %v1002_v16 }
  0xb7   :  { %3283 = vmatprep.subr.mxu1 %v1293_v41  ;;  %v1307_v41 = vand.u32 4294901760, %v1306_v44  ;;  %3256 = vmatprep.subr.mxu0 %v5015_v58  ;;  %v5038_v44 = vand.u32 4294901760, %v1003_v28 }
  0xb8   :  { %3284 = vmatpush3.msra.mxu1 %v1181_v12  ;;  %v5029_v12 = vand.u32 4294901760, %v1019_v61  ;;  %v1201_v30 = vsub.f32 %v5008_v25, %v6093_v15  ;;  %3257 = vmatpush3.msra.mxu0 %v5021_v55  ;;  %v1314_v54 = vand.u32 4294901760, %v1313_v46 }
  0xb9   :  { %3285 = vmatprep.subr.mxu1 %v1300_v3  ;;  %v5036_v3 = vsub.f32 %v1004_v6, %v5021_v55  ;;  %v5050_v63 = vsub.f32 %v1003_v28, %v5038_v44 }
  0xba   :  { %3286 = vmatpush3.msra.mxu1 %v1188_v50  ;;  %v5043_v37 = vsub.f32 %v1019_v61, %v5029_v12  ;;  %v5045_v50 = vand.u32 4294901760, %v1018_v47  ;;  %3258 = vmatprep.subr.mxu0 %v5029_v12  ;;  %v1202_v6 = vand.u32 4294901760, %v1201_v30  ;;  %v1320_v61 = vsub.f32 %v5027_v4, %v6096_v52 }
  0xbb   :  { %6292 = vst [vmem:[#allocation18_spill] sm:$0xff] %v5036_v3  ;;  %3287 = vmatprep.subr.mxu1 %v1307_v41  ;;  %v6100_v15 = vand.u32 4294901760, %v5036_v3  ;;  %6294 = vst [vmem:[#allocation20_spill] sm:$0xff] %v5050_v63  ;;  %3259 = vmatpush3.msra.mxu0 %v5038_v44  ;;  %v5062_v30 = vand.u32 4294901760, %v1017_v53  ;;  %v6107_v28 = vand.u32 4294901760, %v5050_v63  ;;  %v5072_v52 = vand.u32 4294901760, %v1001_v0 }
  0xbc   :  { %6293 = vst [vmem:[#allocation19_spill] sm:$0xff] %v5043_v37  ;;  %3288 = vmatpush3.msra.mxu1 %v1195_v17  ;;  %v6104_v41 = vand.u32 4294901760, %v5043_v37  ;;  %v5060_v46 = vsub.f32 %v1018_v47, %v5045_v50  ;;  %3260 = vmatprep.subr.mxu0 %v5045_v50  ;;  %v1321_v47 = vand.u32 4294901760, %v1320_v61 }
  0xbd   :  { %3289 = vmatprep.subr.mxu1 %v1314_v54  ;;  %v1208_v17 = vsub.f32 %v5036_v3, %v6100_v15  ;;  %v5070_v54 = vsub.f32 %v1002_v16, %v5052_v18  ;;  %3261 = vmatpush3.msra.mxu0 %v5052_v18  ;;  %v5080_v32 = vsub.f32 %v1017_v53, %v5062_v30  ;;  %v1000_v15 = vld [vmem:[#allocation7 + $0x18] sm:$0xff] }
  0xbe   :  { %6295 = vst [vmem:[#allocation21_spill] sm:$0xff] %v5060_v46  ;;  %3290 = vmatpush3.msra.mxu1 %v1202_v6  ;;  %v1327_v60 = vsub.f32 %v5043_v37, %v6104_v41  ;;  %v6112_v6 = vand.u32 4294901760, %v5060_v46  ;;  %3262 = vmatprep.subr.mxu0 %v5062_v30  ;;  %v1215_v34 = vsub.f32 %v5050_v63, %v6107_v28  ;;  %v5101_v37 = vand.u32 4294901760, %v1000_v15 }
  0xbf   :  { %6296 = vst [vmem:[#allocation22_spill] sm:$0xff] %v5070_v54  ;;  %6297 = vst [vmem:[#allocation23_spill] sm:$0xff] %v5080_v32  ;;  %v1209_v16 = vand.u32 4294901760, %v1208_v17  ;;  %v6115_v57 = vand.u32 4294901760, %v5070_v54  ;;  %v5088_v61 = vsub.f32 %v1001_v0, %v5072_v52  ;;  %3263 = vmatpush3.msra.mxu0 %v5072_v52  ;;  %3291 = vmatprep.subr.mxu1 %v1321_v47  ;;  %v6118_v17 = vand.u32 4294901760, %v5080_v32 }
  0xc0   :  { %v1328_v41 = vand.u32 4294901760, %v1327_v60  ;;  %v1334_v53 = vsub.f32 %v5060_v46, %v6112_v6  ;;  %v1216_v28 = vand.u32 4294901760, %v1215_v34  ;;  %6300 = vst [vmem:[#allocation29_spill] sm:$0xff] %v5101_v37  ;;  %v1014_v60 = vld [vmem:[#allocation7 + $0x88] sm:$0xff]  ;;  %v5107_v46 = vsub.f32 %v1016_v10, %v5095_v14  ;;  %3264 = vmatprep.subr.mxu0 %v5095_v14 }
  0xc1   :  { %6298 = vst [vmem:[#allocation24_spill] sm:$0xff] %v5088_v61  ;;  %3292 = vmatpush3.msra.mxu1 %v1209_v16  ;;  %v1222_v0 = vsub.f32 %v5070_v54, %v6115_v57  ;;  %v6123_v63 = vand.u32 4294901760, %v5088_v61  ;;  %v1341_v6 = vsub.f32 %v5080_v32, %v6118_v17  ;;  %v5109_v16 = vand.u32 4294901760, %v1015_v56  ;;  %v998_v34 = vld [vmem:[#allocation7 + $0x8] sm:$0xff]  ;;  %v1013_v17 = vld [vmem:[#allocation7 + $0x80] sm:$0xff]  ;;  %3265 = vmatpush3.msra.mxu0 %v5101_v37 }
  0xc2   :  { %3293 = vmatprep.subr.mxu1 %v1328_v41  ;;  %v1335_v47 = vand.u32 4294901760, %v1334_v53  ;;  %6301 = vst [vmem:[#allocation30_spill] sm:$0xff] %v5107_v46  ;;  %v5116_v41 = vsub.f32 %v1000_v15, %v5101_v37  ;;  %v5118_v53 = vand.u32 4294901760, %v999_v38  ;;  %v6128_v32 = vand.u32 4294901760, %v5107_v46 }
  0xc3   :  { %6302 = vst [vmem:[#allocation31_spill] sm:$0xff] %v5109_v16  ;;  %3294 = vmatpush3.msra.mxu1 %v1216_v28  ;;  %v1223_v57 = vand.u32 4294901760, %v1222_v0  ;;  %v1229_v54 = vsub.f32 %v5088_v61, %v6123_v63  ;;  %v1342_v10 = vand.u32 4294901760, %v1341_v6  ;;  %v5123_v3 = vsub.f32 %v1015_v56, %v5109_v16  ;;  %v997_v0 = vld [vmem:[#allocation7] sm:$0xff]  ;;  %3266 = vmatprep.subr.mxu0 %v5109_v16 }
  0xc4   :  { %6303 = vst [vmem:[#allocation33_spill] sm:$0xff] %v5116_v41  ;;  %6304 = vst [vmem:[#allocation25_spill] sm:$0xff] %v5118_v53  ;;  %3295 = vmatprep.subr.mxu1 %v1335_v47  ;;  %v5125_v28 = vand.u32 4294901760, %v1014_v60  ;;  %v6133_v63 = vand.u32 4294901760, %v5116_v41  ;;  %v5130_v61 = vsub.f32 %v999_v38, %v5118_v53  ;;  %v5132_v37 = vand.u32 4294901760, %v998_v34  ;;  %3267 = vmatpush3.msra.mxu0 %v5118_v53 }
  0xc5   :  { %6305 = vst [vmem:[#allocation26_spill] sm:$0xff] %v5123_v3  ;;  %3296 = vmatpush3.msra.mxu1 %v1223_v57  ;;  %v1230_v15 = vand.u32 4294901760, %v1229_v54  ;;  %v1348_v56 = vsub.f32 %v5107_v46, %v6128_v32  ;;  %v6136_v6 = vand.u32 4294901760, %v5123_v3  ;;  %v5142_v57 = vand.u32 4294901760, %v1013_v17 }
  0xc6   :  { %6306 = vst [vmem:[#allocation34_spill] sm:$0xff] %v5125_v28  ;;  %6307 = vst [vmem:[#allocation27_spill] sm:$0xff] %v5130_v61  ;;  %3297 = vmatprep.subr.mxu1 %v1342_v10  ;;  %v5140_v47 = vsub.f32 %v1014_v60, %v5125_v28  ;;  %3268 = vmatprep.subr.mxu0 %v5125_v28  ;;  %v1236_v38 = vsub.f32 %v5116_v41, %v6133_v63  ;;  %v6139_v54 = vand.u32 4294901760, %v5130_v61 }
  0xc7   :  { %6308 = vst [vmem:[#allocation32_spill] sm:$0xff] %v5132_v37  ;;  %6310 = vst [vmem:[#allocation36_spill] sm:$0xff] %v5142_v57  ;;  %3298 = vmatpush3.msra.mxu1 %v1230_v15  ;;  %v5150_v10 = vsub.f32 %v998_v34, %v5132_v37  ;;  %v5152_v32 = vand.u32 4294901760, %v997_v0  ;;  %3269 = vmatpush3.msra.mxu0 %v5132_v37  ;;  %v1349_v60 = vand.u32 4294901760, %v1348_v56 }
  0xc8   :  { %6309 = vst [vmem:[#allocation35_spill] sm:$0xff] %v5140_v47  ;;  %v1355_v46 = vsub.f32 %v5123_v3, %v6136_v6  ;;  %v6142_v15 = vand.u32 4294901760, %v5140_v47  ;;  %v5160_v28 = vsub.f32 %v1013_v17, %v5142_v57  ;;  %3270 = vmatprep.subr.mxu0 %v5142_v57  ;;  %v1237_v63 = vand.u32 4294901760, %v1236_v38 }
  0xc9   :  { %6311 = vst [vmem:[#allocation37_spill] sm:$0xff] %v5150_v10  ;;  %6312 = vst [vmem:[#allocation38_spill] sm:$0xff] %v5152_v32  ;;  %v1243_v34 = vsub.f32 %v5130_v61, %v6139_v54  ;;  %v6143_v41 = vand.u32 4294901760, %v5150_v10  ;;  %v5168_v56 = vsub.f32 %v997_v0, %v5152_v32  ;;  %3271 = vmatpush3.msra.mxu0 %v5152_v32  ;;  %3299 = vmatprep.subr.mxu1 %v1349_v60 }
  0xca   :  { %6313 = vst [vmem:[#allocation39_spill] sm:$0xff] %v5160_v28  ;;  %v1356_v6 = vand.u32 4294901760, %v1355_v46  ;;  %v1362_v17 = vsub.f32 %v5140_v47, %v6142_v15  ;;  %v6144_v3 = vand.u32 4294901760, %v5160_v28  ;;  %3310 = vmatprep.subr.mxu0 %v4870_v22  ;;  %3300 = vmatpush3.msra.mxu1 %v1237_v63 }
  0xcb   :  { %6314 = vst [vmem:[#allocation40_spill] sm:$0xff] %v5168_v56  ;;  %v1244_v38 = vand.u32 4294901760, %v1243_v34  ;;  %v1250_v54 = vsub.f32 %v5150_v10, %v6143_v41  ;;  %v6148_v0 = vand.u32 4294901760, %v5168_v56 }
  0xcc   :  { %3301 = vmatprep.subr.mxu1 %v1356_v6  ;;  %v1363_v61 = vand.u32 4294901760, %v1362_v17  ;;  %v1369_v46 = vsub.f32 %v5160_v28, %v6144_v3  ;;  %v118_v6 = vlaneseq }
  0xcd   :  { %3302 = vmatpush3.msra.mxu1 %v1244_v38  ;;  %v1251_v60 = vand.u32 4294901760, %v1250_v54  ;;  %v1257_v15 = vsub.f32 %v5168_v56, %v6148_v0  ;;  %v116_v38 = vld [vmem:[%s6015_s2] sm:$0x3] }
  0xce   :  { %3303 = vmatprep.subr.mxu1 %v1363_v61  ;;  %v1370_v63 = vand.u32 4294901760, %v1369_v46  ;;  %v119_v17 = vshrl.u32 %v118_v6, 7 }
  0xcf   :  { %3304 = vmatpush3.msra.mxu1 %v1251_v60  ;;  %v1258_v34 = vand.u32 4294901760, %v1257_v15 }
  0xd0   :  { %3305 = vmatprep.subr.mxu1 %v1370_v63  ;;  %v120_v41 = vsub.s32 0, %v119_v17  ;;  %v124_v3 = vsub.s32 1, %v119_v17 }
  0xd1   :  { %3306 = vmatpush3.msra.mxu1 %v1258_v34 }
  0xd2   :  { %3345 = vmatprep.subr.mxu1 %v4865_v20  ;;  %v121_v22 = vrot.slane %v116_v38, %v120_v41  ;;  %v125_v61 = vrot.slane %v116_v38, %v124_v3 }
 0x11f   :  { %v231_v54 = vpop.f32.mrf.mxu0 }
 0x120   :  { %v232_v60 = vadd.f32 %v231_v54, %v121_v22 }
 0x121   :  { %v233_v28 = vpop.f32.mrf.mxu0 }
 0x122   :  { %v234_v63 = vadd.f32 %v233_v28, %v125_v61 }
 0x125   :  { %v463_v0 = vpop.f32.mrf.mxu1 }
 0x126   :  { %v464_v10 = vadd.f32 %v463_v0, %v232_v60 }
 0x127   :  { %v465_v15 = vpop.f32.mrf.mxu1 }
 0x128   :  { %v466_v6 = vadd.f32 %v465_v15, %v234_v63 }
 0x13f   :  { %v600_v46 = vpop.f32.mrf.mxu0 }
 0x140   :  { %v601_v20 = vadd.f32 %v600_v46, %v464_v10 }
 0x141   :  { %v602_v34 = vpop.f32.mrf.mxu0 }
 0x142   :  { %v603_v57 = vadd.f32 %v602_v34, %v466_v6  ;;  %v6315_v34 = vld [vmem:[#allocation17_spill] sm:$0xff]  ;;  %v6316_v6 = vld [vmem:[#allocation28_spill] sm:$0xff] }
 0x147   :  { %v706_v56 = vpop.f32.mrf.mxu1 }
 0x148   :  { %v707_v37 = vadd.f32 %v706_v56, %v601_v20 }
 0x149   :  { %v708_v32 = vpop.f32.mrf.mxu1 }
 0x14a   :  { %v709_v16 = vadd.f32 %v708_v32, %v603_v57 }
 0x160   :  { %v874_v47 = vpop.f32.mrf.mxu0 }
 0x161   :  { %v875_v17 = vadd.f32 %v874_v47, %v707_v37 }
 0x162   :  { %v876_v53 = vpop.f32.mrf.mxu0 }
 0x163   :  { %v877_v14 = vadd.f32 %v876_v53, %v709_v16 }
 0x169   :  { %v978_v41 = vpop.f32.mrf.mxu1 }
 0x16a   :  { %v979_v4 = vadd.f32 %v978_v41, %v875_v17  ;;  %v6317_v17 = vld [vmem:[#allocation18_spill] sm:$0xff]  ;;  %v6318_v41 = vld [vmem:[#allocation29_spill] sm:$0xff] }
 0x16b   :  { %v980_v3 = vpop.f32.mrf.mxu1 }
 0x16c   :  { %v3235_v38 = vmul.f32 -1.442695, %v979_v4  ;;  %v981_v22 = vadd.f32 %v980_v3, %v877_v14  ;;  %v6319_v3 = vld [vmem:[#allocation19_spill] sm:$0xff] }
 0x16e   :  { %4085 = vpow2.f32 %v3235_v38  ;;  %v3236_v28 = vmul.f32 -1.442695, %v981_v22  ;;  %v6320_v38 = vld [vmem:[#allocation31_spill] sm:$0xff] }
 0x170   :  { %4087 = vpow2.f32 %v3236_v28  ;;  %v6322_v28 = vld [vmem:[#allocation25_spill] sm:$0xff] }
 0x17b   :  { %v4086_v54 = vpop.eup %4085 }
 0x17c   :  { %v989_v0 = vadd.f32 1.0, %v4086_v54  ;;  %v6323_v54 = vld [vmem:[#allocation21_spill] sm:$0xff] }
 0x17d   :  { %v4088_v61 = vpop.eup %4087 }
 0x17e   :  { %4089 = vrcp.f32 %v989_v0  ;;  %v990_v10 = vadd.f32 1.0, %v4088_v61  ;;  %v6324_v0 = vld [vmem:[#allocation34_spill] sm:$0xff] }
 0x17f   :  { %v6325_v61 = vld [vmem:[#allocation22_spill] sm:$0xff] }
 0x180   :  { %4091 = vrcp.f32 %v990_v10  ;;  %v6326_v10 = vld [vmem:[#allocation32_spill] sm:$0xff] }
 0x18b   :  { %v4090_v46 = vpop.eup %4089 }
 0x18c   :  { %v995_v20 = vmul.f32 %v4090_v46, %v979_v4  ;;  %v6327_v46 = vld [vmem:[#allocation23_spill] sm:$0xff] }
 0x18d   :  { %v4092_v56 = vpop.eup %4091 }
 0x18e   :  { %v5190_v32 = vand.u32 4294901760, %v995_v20  ;;  %v996_v37 = vmul.f32 %v4092_v56, %v981_v22  ;;  %v6321_v22 = vld [vmem:[#allocation20_spill] sm:$0xff] }
 0x18f   :  { %v6329_v56 = vld [vmem:[#allocation24_spill] sm:$0xff] }
 0x190   :  { %v5193_v16 = vsub.f32 %v995_v20, %v5190_v32  ;;  %v5195_v53 = vand.u32 4294901760, %v996_v37  ;;  %v6328_v20 = vld [vmem:[#allocation36_spill] sm:$0xff] }
 0x192   :  { %v1140_v14 = vand.u32 4294901760, %v5193_v16  ;;  %v1133_v47 = vsub.f32 %v996_v37, %v5195_v53  ;;  %1373 = vmatprep.mubr.f32.mxu1 %v5195_v53  ;;  %v6330_v37 = vld [vmem:[#allocation38_spill] sm:$0xff] }
 0x193   :  { %1375 = vmatmul.mubr.f32.vlgmr.msra.gmra.mxu1 %v5190_v32 }
 0x194   :  { %3346 = vmatpush3.msra.mxu1 %v4867_v7  ;;  %v1134_v4 = vand.u32 4294901760, %v1133_v47  ;;  %v1141_v57 = vsub.f32 %v5193_v16, %v1140_v14 }
 0x195   :  { %3347 = vmatprep.subr.mxu1 %v4872_v1 }
 0x196   :  { %3348 = vmatpush3.msra.mxu1 %v4878_v31  ;;  %1617 = vmatprep.mubr.f32.mxu1 %v1134_v4  ;;  %v1135_v60 = vsub.f32 %v1133_v47, %v1134_v4  ;;  %v1142_v63 = vand.u32 4294901760, %v1141_v57  ;;  %v6332_v4 = vld [vmem:[#allocation15_spill] sm:$0xff]  ;;  %v6333_v57 = vld [vmem:[#allocation33_spill] sm:$0xff] }
 0x197   :  { %3349 = vmatprep.subr.mxu1 %v4885_v49 }
 0x198   :  { %3350 = vmatpush3.msra.mxu1 %v4892_v35  ;;  %v1136_v15 = vand.u32 4294901760, %v1135_v60  ;;  %v6334_v60 = vld [vmem:[#allocation26_spill] sm:$0xff] }
 0x199   :  { %3351 = vmatprep.subr.mxu1 %v4902_v40 }
 0x19a   :  { %3352 = vmatpush3.msra.mxu1 %v4912_v19  ;;  %1137 = vmatprep.mubr.f32.mxu0 %v1136_v15  ;;  %v6335_v15 = vld [vmem:[#allocation27_spill] sm:$0xff] }
 0x19b   :  { %3353 = vmatprep.subr.mxu1 %v4935_v11  ;;  %1143 = vmatmul.mubr.f32.vlgmr.msra.gmra.mxu0 %v1142_v63  ;;  %v6336_v63 = vld [vmem:[#allocation35_spill] sm:$0xff] }
 0x19c   :  { %3311 = vmatpush3.msra.mxu0 %v4876_v42  ;;  %3354 = vmatpush3.msra.mxu1 %v4941_v23 }
 0x19d   :  { %3312 = vmatprep.subr.mxu0 %v4883_v33  ;;  %1510 = vmatprep.mubr.f32.mxu0 %v1133_v47  ;;  %v6331_v47 = vld [vmem:[#allocation30_spill] sm:$0xff] }
 0x19e   :  { %3355 = vmatprep.subr.mxu1 %v4949_v43  ;;  %3313 = vmatpush3.msra.mxu0 %v4890_v9 }
 0x19f   :  { %3356 = vmatpush3.msra.mxu1 %v4958_v8  ;;  %3314 = vmatprep.subr.mxu0 %v4900_v39 }
 0x1a0   :  { %3357 = vmatprep.subr.mxu1 %v4965_v62  ;;  %3315 = vmatpush3.msra.mxu0 %v4910_v29 }
 0x1a1   :  { %3358 = vmatpush3.msra.mxu1 %v4972_v48  ;;  %3316 = vmatprep.subr.mxu0 %v4920_v36 }
 0x1a2   :  { %3359 = vmatprep.subr.mxu1 %v4982_v45  ;;  %3317 = vmatpush3.msra.mxu0 %v4928_v2 }
 0x1a3   :  { %3360 = vmatpush3.msra.mxu1 %v4992_v26  ;;  %3318 = vmatprep.subr.mxu0 %v4947_v13 }
 0x1a4   :  { %3361 = vmatprep.subr.mxu1 %v5015_v58  ;;  %3319 = vmatpush3.msra.mxu0 %v4956_v59 }
 0x1a5   :  { %3362 = vmatpush3.msra.mxu1 %v5021_v55  ;;  %3320 = vmatprep.subr.mxu0 %v4963_v51 }
 0x1a6   :  { %3363 = vmatprep.subr.mxu1 %v5029_v12  ;;  %3321 = vmatpush3.msra.mxu0 %v4970_v27 }
 0x1a7   :  { %3364 = vmatpush3.msra.mxu1 %v5038_v44  ;;  %3322 = vmatprep.subr.mxu0 %v4980_v21 }
 0x1a8   :  { %3365 = vmatprep.subr.mxu1 %v5045_v50  ;;  %3323 = vmatpush3.msra.mxu0 %v4990_v24 }
 0x1a9   :  { %3366 = vmatpush3.msra.mxu1 %v5052_v18  ;;  %3324 = vmatprep.subr.mxu0 %v5000_v5 }
 0x1aa   :  { %3367 = vmatprep.subr.mxu1 %v5062_v30  ;;  %3325 = vmatpush3.msra.mxu0 %v5008_v25 }
 0x1ab   :  { %3368 = vmatpush3.msra.mxu1 %v5072_v52  ;;  %3326 = vmatprep.subr.mxu0 %v6315_v34 }
 0x1ac   :  { %3369 = vmatprep.subr.mxu1 %v6316_v6  ;;  %3327 = vmatpush3.msra.mxu0 %v6317_v17 }
 0x1ad   :  { %3370 = vmatpush3.msra.mxu1 %v6318_v41  ;;  %3328 = vmatprep.subr.mxu0 %v6319_v3 }
 0x1ae   :  { %3371 = vmatprep.subr.mxu1 %v6320_v38  ;;  %3329 = vmatpush3.msra.mxu0 %v6321_v22 }
 0x1af   :  { %3372 = vmatpush3.msra.mxu1 %v6322_v28  ;;  %3330 = vmatprep.subr.mxu0 %v6323_v54 }
 0x1b0   :  { %3373 = vmatprep.subr.mxu1 %v6324_v0  ;;  %3331 = vmatpush3.msra.mxu0 %v6325_v61 }
 0x1b1   :  { %3374 = vmatpush3.msra.mxu1 %v6326_v10  ;;  %3332 = vmatprep.subr.mxu0 %v6327_v46 }
 0x1b2   :  { %3375 = vmatprep.subr.mxu1 %v6328_v20  ;;  %3333 = vmatpush3.msra.mxu0 %v6329_v56 }
 0x1b3   :  { %3376 = vmatpush3.msra.mxu1 %v6330_v37  ;;  %3334 = vmatprep.subr.mxu0 %v6331_v47 }
 0x1b4   :  { %1621 = vmatmul.mubr.f32.vlgmr.msra.gmra.mxu1 %v1140_v14  ;;  %3415 = vmatprep.subr.mxu1 %v6332_v4  ;;  %v6337_v14 = vld [vmem:[#allocation37_spill] sm:$0xff]  ;;  %v6338_v4 = vld [vmem:[#allocation39_spill] sm:$0xff] }
 0x1b5   :  { %3335 = vmatpush3.msra.mxu0 %v6333_v57  ;;  %3416 = vmatpush3.msra.mxu1 %v4867_v7  ;;  %v6339_v7 = vld [vmem:[#allocation40_spill] sm:$0xff] }
 0x1b6   :  { %1891 = vmatprep.mubr.f32.mxu1 %v5195_v53  ;;  %3336 = vmatprep.subr.mxu0 %v6334_v60 }
 0x1b7   :  { %3417 = vmatprep.subr.mxu1 %v4872_v1  ;;  %3337 = vmatpush3.msra.mxu0 %v6335_v15  ;;  %v6340_v1 = vld [vmem:[#allocation16_spill] sm:$0xff] }
 0x1b8   :  { %3418 = vmatpush3.msra.mxu1 %v4878_v31  ;;  %3338 = vmatprep.subr.mxu0 %v6336_v63  ;;  %v6341_v31 = vand.u32 4294901760, %v6340_v1 }
 0x1b9   :  { %3419 = vmatprep.subr.mxu1 %v4885_v49  ;;  %3339 = vmatpush3.msra.mxu0 %v6337_v14  ;;  %v6342_v49 = vand.u32 4294901760, %v4876_v42  ;;  %v6346_v42 = vand.u32 4294901760, %v4910_v29  ;;  %v6350_v29 = vand.u32 4294901760, %v4956_v59  ;;  %v6357_v59 = vand.u32 4294901760, %v6315_v34 }
 0x1ba   :  { %3420 = vmatpush3.msra.mxu1 %v4892_v35  ;;  %3340 = vmatprep.subr.mxu0 %v6338_v4  ;;  %v6343_v35 = vand.u32 4294901760, %v4883_v33  ;;  %v6347_v33 = vand.u32 4294901760, %v4920_v36  ;;  %v6351_v36 = vand.u32 4294901760, %v4963_v51  ;;  %v6360_v51 = vand.u32 4294901760, %v6321_v22 }
 0x1bb   :  { %3421 = vmatprep.subr.mxu1 %v4902_v40  ;;  %3341 = vmatpush3.msra.mxu0 %v6339_v7  ;;  %v6344_v40 = vand.u32 4294901760, %v4890_v9  ;;  %v6348_v9 = vand.u32 4294901760, %v4928_v2  ;;  %v6352_v2 = vand.u32 4294901760, %v4970_v27  ;;  %v6362_v27 = vand.u32 4294901760, %v6325_v61 }
 0x1bc   :  { %3422 = vmatpush3.msra.mxu1 %v4912_v19  ;;  %1513 = vmatmul.mubr.f32.vlgmr.msra.gmra.mxu0 %v5193_v16  ;;  %v6345_v19 = vand.u32 4294901760, %v4900_v39  ;;  %v6349_v39 = vand.u32 4294901760, %v4947_v13  ;;  %v6355_v13 = vand.u32 4294901760, %v5000_v5  ;;  %v6369_v5 = vand.u32 4294901760, %v6335_v15  ;;  %v1912_v16 = vld [vmem:[#allocation8 + $0x68] sm:$0xff] }
 0x1bd   :  { %3380 = vmatprep.subr.mxu0 %v6341_v31  ;;  %3423 = vmatprep.subr.mxu1 %v4935_v11  ;;  %v6353_v11 = vand.u32 4294901760, %v4980_v21  ;;  %v6365_v21 = vand.u32 4294901760, %v6331_v47 }
 0x1be   :  { %3381 = vmatpush3.msra.mxu0 %v6342_v49  ;;  %1787 = vmatprep.mubr.f32.mxu0 %v5195_v53  ;;  %v1911_v53 = vld [vmem:[#allocation8 + $0x60] sm:$0xff]  ;;  %v1908_v49 = vld [vmem:[#allocation8 + $0x48] sm:$0xff] }
 0x1bf   :  { %3424 = vmatpush3.msra.mxu1 %v4941_v23  ;;  %3382 = vmatprep.subr.mxu0 %v6343_v35  ;;  %v6354_v23 = vand.u32 4294901760, %v4990_v24  ;;  %v6367_v24 = vand.u32 4294901760, %v6334_v60 }
 0x1c0   :  { %3425 = vmatprep.subr.mxu1 %v4949_v43  ;;  %3383 = vmatpush3.msra.mxu0 %v6344_v40  ;;  %v6356_v43 = vand.u32 4294901760, %v5008_v25  ;;  %v6370_v25 = vand.u32 4294901760, %v6336_v63 }
 0x1c1   :  { %3426 = vmatpush3.msra.mxu1 %v4958_v8  ;;  %3384 = vmatprep.subr.mxu0 %v6345_v19  ;;  %v6358_v8 = vand.u32 4294901760, %v6317_v17  ;;  %v5377_v17 = vand.u32 4294901760, %v1911_v53  ;;  %v5452_v19 = vand.u32 4294901760, %v1908_v49 }
 0x1c2   :  { %3427 = vmatprep.subr.mxu1 %v4965_v62  ;;  %3385 = vmatpush3.msra.mxu0 %v6346_v42  ;;  %v6361_v62 = vand.u32 4294901760, %v6323_v54  ;;  %v1907_v42 = vld [vmem:[#allocation8 + $0x40] sm:$0xff] }
 0x1c3   :  { %3428 = vmatpush3.msra.mxu1 %v4972_v48  ;;  %3386 = vmatprep.subr.mxu0 %v6347_v33  ;;  %v6363_v48 = vand.u32 4294901760, %v6327_v46 }
 0x1c4   :  { %3429 = vmatprep.subr.mxu1 %v4982_v45  ;;  %3387 = vmatpush3.msra.mxu0 %v6348_v9  ;;  %v6366_v45 = vand.u32 4294901760, %v6333_v57  ;;  %v5461_v9 = vsub.f32 %v1908_v49, %v5452_v19  ;;  %v1900_v49 = vld [vmem:[#allocation8 + $0x8] sm:$0xff] }
 0x1c5   :  { %3430 = vmatpush3.msra.mxu1 %v4992_v26  ;;  %3388 = vmatprep.subr.mxu0 %v6349_v39  ;;  %v6368_v26 = vmov 0.0   ;;  %v5463_v39 = vand.u32 4294901760, %v1907_v42 }
 0x1c6   :  { %3431 = vmatprep.subr.mxu1 %v5015_v58  ;;  %3389 = vmatpush3.msra.mxu0 %v6350_v29  ;;  %v6371_v58 = vand.u32 4294901760, %v6337_v14  ;;  %v1906_v29 = vld [vmem:[#allocation8 + $0x38] sm:$0xff] }
 0x1c7   :  { %3432 = vmatpush3.msra.mxu1 %v5021_v55  ;;  %3390 = vmatprep.subr.mxu0 %v6351_v36  ;;  %v6372_v55 = vand.u32 4294901760, %v6338_v4 }
 0x1c8   :  { %3433 = vmatprep.subr.mxu1 %v5029_v12  ;;  %3391 = vmatpush3.msra.mxu0 %v6352_v2  ;;  %v6373_v12 = vand.u32 4294901760, %v6339_v7  ;;  %v5472_v2 = vand.u32 4294901760, %v5461_v9 }
 0x1c9   :  { %3434 = vmatpush3.msra.mxu1 %v5038_v44  ;;  %3392 = vmatprep.subr.mxu0 %v6353_v11  ;;  %v1914_v44 = vld [vmem:[#allocation8 + $0x78] sm:$0xff]  ;;  %v5475_v11 = vsub.f32 %v1907_v42, %v5463_v39 }
 0x1ca   :  { %3435 = vmatprep.subr.mxu1 %v5045_v50  ;;  %3393 = vmatpush3.msra.mxu0 %v6354_v23  ;;  %v5371_v50 = vand.u32 4294901760, %v1914_v44  ;;  %6380 = vst [vmem:[#allocation20_spill] sm:$0xff] %v5472_v2  ;;  %v5477_v23 = vand.u32 4294901760, %v1906_v29 }
 0x1cb   :  { %3436 = vmatpush3.msra.mxu1 %v5052_v18  ;;  %3394 = vmatprep.subr.mxu0 %v6355_v13  ;;  %v6359_v18 = vand.u32 4294901760, %v6319_v3  ;;  %v1909_v3 = vld [vmem:[#allocation8 + $0x50] sm:$0xff] }
 0x1cc   :  { %3437 = vmatprep.subr.mxu1 %v5062_v30  ;;  %3395 = vmatpush3.msra.mxu0 %v6356_v43  ;;  %v1913_v30 = vld [vmem:[#allocation8 + $0x70] sm:$0xff]  ;;  %v5385_v22 = vand.u32 4294901760, %v1909_v3  ;;  %v2052_v43 = vsub.f32 %v5461_v9, %v5472_v2 }
 0x1cd   :  { %3438 = vmatpush3.msra.mxu1 %v5072_v52  ;;  %3396 = vmatprep.subr.mxu0 %v6357_v59  ;;  %v6364_v52 = vand.u32 4294901760, %v6329_v56  ;;  %v5373_v34 = vand.u32 4294901760, %v1913_v30  ;;  %v1905_v13 = vld [vmem:[#allocation8 + $0x30] sm:$0xff]  ;;  %v5486_v59 = vand.u32 4294901760, %v5475_v11 }
 0x1ce   :  { %3439 = vmatprep.subr.mxu1 %v6316_v6  ;;  %3397 = vmatpush3.msra.mxu0 %v6358_v8  ;;  %v5375_v6 = vand.u32 4294901760, %v1912_v16  ;;  %v5405_v46 = vsub.f32 %v1909_v3, %v5385_v22  ;;  %v5489_v8 = vsub.f32 %v1906_v29, %v5477_v23  ;;  %v1901_v3 = vld [vmem:[#allocation8 + $0x10] sm:$0xff] }
 0x1cf   :  { %3440 = vmatpush3.msra.mxu1 %v6318_v41  ;;  %3398 = vmatprep.subr.mxu0 %v6359_v18  ;;  %v1910_v41 = vld [vmem:[#allocation8 + $0x58] sm:$0xff]  ;;  %6381 = vst [vmem:[#allocation25_spill] sm:$0xff] %v5486_v59  ;;  %v5491_v18 = vand.u32 4294901760, %v1905_v13 }
 0x1d0   :  { %3441 = vmatprep.subr.mxu1 %v6320_v38  ;;  %3399 = vmatpush3.msra.mxu0 %v6360_v51  ;;  %v5380_v38 = vsub.f32 %v1914_v44, %v5371_v50  ;;  %v5391_v54 = vsub.f32 %v1912_v16, %v5375_v6  ;;  %v5433_v4 = vand.u32 4294901760, %v5405_v46  ;;  %v1904_v51 = vld [vmem:[#allocation8 + $0x28] sm:$0xff] }
 0x1d1   :  { %3442 = vmatpush3.msra.mxu1 %v6322_v28  ;;  %3400 = vmatprep.subr.mxu0 %v6361_v62  ;;  %v5388_v28 = vsub.f32 %v1913_v30, %v5373_v34  ;;  %v5497_v62 = vand.u32 4294901760, %v2052_v43 }
 0x1d2   :  { %3443 = vmatprep.subr.mxu1 %v6324_v0  ;;  %3401 = vmatpush3.msra.mxu0 %v6362_v27  ;;  %v5394_v0 = vsub.f32 %v1911_v53, %v5377_v17  ;;  %v5398_v61 = vand.u32 4294901760, %v5380_v38  ;;  %v5411_v56 = vand.u32 4294901760, %v5391_v54  ;;  %v2045_v40 = vsub.f32 %v5405_v46, %v5433_v4 }
 0x1d3   :  { %3444 = vmatpush3.msra.mxu1 %v6326_v10  ;;  %3402 = vmatprep.subr.mxu0 %v6363_v48  ;;  %6382 = vst [vmem:[#allocation21_spill] sm:$0xff] %v5497_v62  ;;  %v2059_v27 = vsub.f32 %v5475_v11, %v5486_v59  ;;  %v5502_v48 = vand.u32 4294901760, %v5489_v8  ;;  %v4095_v59 = vld [vmem:[#allocation2] sm:$0xf] }
 0x1d4   :  { %3445 = vmatprep.subr.mxu1 %v6328_v20  ;;  %3403 = vmatpush3.msra.mxu0 %v6364_v52  ;;  %v5408_v20 = vand.u32 4294901760, %v5388_v28  ;;  %v2010_v47 = vsub.f32 %v5380_v38, %v5398_v61  ;;  %v2024_v15 = vsub.f32 %v5391_v54, %v5411_v56  ;;  %v5469_v36 = vand.u32 4294901760, %v2045_v40 }
 0x1d5   :  { %3446 = vmatpush3.msra.mxu1 %v6330_v37  ;;  %3404 = vmatprep.subr.mxu0 %v6365_v21  ;;  %v5414_v37 = vand.u32 4294901760, %v5394_v0  ;;  %6383 = vst [vmem:[#allocation34_spill] sm:$0xff] %v5502_v48  ;;  %v5505_v52 = vsub.f32 %v1905_v13, %v5491_v18  ;;  %v5509_v21 = vand.u32 4294901760, %v1904_v51  ;;  %v5568_v13 = vand.u32 4294901760, %v1900_v49 }
 0x1d6   :  { %1893 = vmatmul.mubr.f32.vlgmr.msra.gmra.mxu1 %v5190_v32  ;;  %3405 = vmatpush3.msra.mxu0 %v6366_v45  ;;  %v2017_v60 = vsub.f32 %v5388_v28, %v5408_v20  ;;  %v5428_v63 = vand.u32 4294901760, %v2010_v47  ;;  %v5440_v1 = vand.u32 4294901760, %v2024_v15  ;;  %6379 = vst [vmem:[#allocation31_spill] sm:$0xff] %v5469_v36  ;;  %v1903_v45 = vld [vmem:[#allocation8 + $0x20] sm:$0xff] }
 0x1d7   :  { %3406 = vmatprep.subr.mxu0 %v6367_v24  ;;  %3689 = vmatprep.subr.mxu1 %v6368_v26  ;;  %v2031_v14 = vsub.f32 %v5394_v0, %v5414_v37  ;;  %v5513_v24 = vand.u32 4294901760, %v2059_v27 }
 0x1d8   :  { %3407 = vmatpush3.msra.mxu0 %v6369_v5  ;;  %6374 = vst [vmem:[#allocation17_spill] sm:$0xff] %v5428_v63  ;;  %v5436_v7 = vand.u32 4294901760, %v2017_v60  ;;  %3690 = vmatpush3.msra.mxu1 %v5428_v63  ;;  %6376 = vst [vmem:[#allocation18_spill] sm:$0xff] %v5440_v1  ;;  %v2066_v5 = vsub.f32 %v5489_v8, %v5502_v48 }
 0x1d9   :  { %3408 = vmatprep.subr.mxu0 %v6370_v25  ;;  %3691 = vmatprep.subr.mxu1 %v6368_v26  ;;  %v5448_v35 = vand.u32 4294901760, %v2031_v14  ;;  %6384 = vst [vmem:[#allocation22_spill] sm:$0xff] %v5513_v24  ;;  %v5518_v25 = vand.u32 4294901760, %v5505_v52  ;;  %v5552_v14 = vand.u32 4294901760, %v1901_v3 }
 0x1da   :  { %3409 = vmatpush3.msra.mxu0 %v6371_v58  ;;  %6375 = vst [vmem:[#allocation28_spill] sm:$0xff] %v5436_v7  ;;  %3692 = vmatpush3.msra.mxu1 %v5436_v7  ;;  %v5520_v58 = vand.u32 4294901760, %v1903_v45  ;;  %v5528_v44 = vand.u32 4294901760, %v2066_v5 }
 0x1db   :  { %3410 = vmatprep.subr.mxu0 %v6372_v55  ;;  %6377 = vst [vmem:[#allocation29_spill] sm:$0xff] %v5448_v35  ;;  %3693 = vmatprep.subr.mxu1 %v6368_v26  ;;  %6385 = vst [vmem:[#allocation32_spill] sm:$0xff] %v5518_v25  ;;  %v5524_v55 = vsub.f32 %v1904_v51, %v5509_v21  ;;  %v2073_v30 = vsub.f32 %v5505_v52, %v5518_v25  ;;  %v1899_v51 = vld [vmem:[#allocation8] sm:$0xff] }
 0x1dc   :  { %3411 = vmatpush3.msra.mxu0 %v6373_v12  ;;  %3694 = vmatpush3.msra.mxu1 %v5440_v1  ;;  %v1902_v12 = vld [vmem:[#allocation8 + $0x18] sm:$0xff]  ;;  %6386 = vst [vmem:[#allocation23_spill] sm:$0xff] %v5528_v44  ;;  %v5533_v16 = vsub.f32 %v1903_v45, %v5520_v58  ;;  %v5566_v29 = vsub.f32 %v1901_v3, %v5552_v14 }
 0x1dd   :  { %1789 = vmatmul.mubr.f32.vlgmr.msra.gmra.mxu0 %v5190_v32  ;;  %3654 = vmatprep.subr.mxu0 %v6368_v26  ;;  %v5383_v32 = vand.u32 4294901760, %v1910_v41  ;;  %v5535_v53 = vand.u32 4294901760, %v1902_v12  ;;  %v5544_v47 = vand.u32 4294901760, %v2073_v30  ;;  %v5587_v30 = vand.u32 4294901760, %v1899_v51 }
 0x1de   :  { %3655 = vmatpush3.msra.mxu0 %v5371_v50  ;;  %3695 = vmatprep.subr.mxu1 %v6368_v26  ;;  %v5547_v60 = vand.u32 4294901760, %v5533_v16  ;;  %v5580_v5 = vand.u32 4294901760, %v5566_v29 }
 0x1df   :  { %3656 = vmatprep.subr.mxu0 %v6368_v26  ;;  %v5401_v10 = vsub.f32 %v1910_v41, %v5383_v32  ;;  %3696 = vmatpush3.msra.mxu1 %v5448_v35  ;;  %v5540_v41 = vand.u32 4294901760, %v5524_v55  ;;  %6388 = vst [vmem:[#allocation24_spill] sm:$0xff] %v5544_v47  ;;  %v5550_v15 = vsub.f32 %v1902_v12, %v5535_v53 }
 0x1e0   :  { %3657 = vmatpush3.msra.mxu0 %v5373_v34  ;;  %3697 = vmatprep.subr.mxu1 %v6368_v26  ;;  %6389 = vst [vmem:[#allocation38_spill] sm:$0xff] %v5547_v60  ;;  %v2087_v40 = vsub.f32 %v5533_v16, %v5547_v60  ;;  %6393 = vst [vmem:[#allocation26_spill] sm:$0xff] %v5580_v5  ;;  %v5583_v12 = vsub.f32 %v1900_v49, %v5568_v13 }
 0x1e1   :  { %3658 = vmatprep.subr.mxu0 %v6368_v26  ;;  %v5420_v57 = vand.u32 4294901760, %v5401_v10  ;;  %6387 = vst [vmem:[#allocation36_spill] sm:$0xff] %v5540_v41  ;;  %v5563_v42 = vand.u32 4294901760, %v5550_v15  ;;  %v5601_v49 = vsub.f32 %v1899_v51, %v5587_v30  ;;  %3721 = vmatprep.mubr.msk.f32.mxu1 %vm4213_vm0, %v6368_v26 }
 0x1e2   :  { %3659 = vmatpush3.msra.mxu0 %v5375_v6  ;;  %v5575_v27 = vand.u32 4294901760, %v2087_v40  ;;  %v5596_v40 = vand.u32 4294901760, %v5583_v12  ;;  %3686 = vmatprep.mubr.msk.f32.mxu0 %vm4213_vm0, %v6368_v26 }
 0x1e3   :  { %3660 = vmatprep.subr.mxu0 %v6368_v26  ;;  %v2038_v31 = vsub.f32 %v5401_v10, %v5420_v57  ;;  %6390 = vst [vmem:[#allocation30_spill] sm:$0xff] %v5563_v42  ;;  %v2094_v45 = vsub.f32 %v5550_v15, %v5563_v42 }
 0x1e4   :  { %3661 = vmatpush3.msra.mxu0 %v5377_v17  ;;  %6392 = vst [vmem:[#allocation33_spill] sm:$0xff] %v5575_v27  ;;  %6395 = vst [vmem:[#allocation35_spill] sm:$0xff] %v5596_v40 }
 0x1e5   :  { %3662 = vmatprep.subr.mxu0 %v6368_v26  ;;  %v5458_v33 = vand.u32 4294901760, %v2038_v31  ;;  %v2080_v31 = vsub.f32 %v5524_v55, %v5540_v41  ;;  %v5591_v3 = vand.u32 4294901760, %v2094_v45  ;;  %v2108_v45 = vsub.f32 %v5583_v12, %v5596_v40 }
 0x1e6   :  { %3663 = vmatpush3.msra.mxu0 %v5383_v32 }
 0x1e7   :  { %3664 = vmatprep.subr.mxu0 %v6368_v26  ;;  %6378 = vst [vmem:[#allocation19_spill] sm:$0xff] %v5458_v33  ;;  %3698 = vmatpush3.msra.mxu1 %v5458_v33  ;;  %v5572_v43 = vand.u32 4294901760, %v2080_v31  ;;  %6394 = vst [vmem:[#allocation27_spill] sm:$0xff] %v5591_v3  ;;  %v2101_v31 = vsub.f32 %v5566_v29, %v5580_v5  ;;  %v5615_v51 = vand.u32 4294901760, %v2108_v45 }
 0x1e8   :  { %3665 = vmatpush3.msra.mxu0 %v5385_v22  ;;  %3699 = vmatprep.subr.mxu1 %v6368_v26 }
 0x1e9   :  { %3666 = vmatprep.subr.mxu0 %v6368_v26  ;;  %3700 = vmatpush3.msra.mxu1 %v5469_v36  ;;  %6391 = vst [vmem:[#allocation15_spill] sm:$0xff] %v5572_v43  ;;  %6398 = vst [vmem:[#allocation40_spill] sm:$0xff] %v5615_v51 }
 0x1ea   :  { %3667 = vmatpush3.msra.mxu0 %v5452_v19  ;;  %3701 = vmatprep.subr.mxu1 %v6368_v26 }
 0x1eb   :  { %3668 = vmatprep.subr.mxu0 %v6368_v26  ;;  %3702 = vmatpush3.msra.mxu1 %v5497_v62 }
 0x1ec   :  { %3669 = vmatpush3.msra.mxu0 %v5463_v39  ;;  %3703 = vmatprep.subr.mxu1 %v6368_v26 }
 0x1ed   :  { %3670 = vmatprep.subr.mxu0 %v6368_v26  ;;  %3704 = vmatpush3.msra.mxu1 %v5513_v24 }
 0x1ee   :  { %3671 = vmatpush3.msra.mxu0 %v5477_v23  ;;  %3705 = vmatprep.subr.mxu1 %v6368_v26 }
 0x1ef   :  { %3672 = vmatprep.subr.mxu0 %v6368_v26  ;;  %3706 = vmatpush3.msra.mxu1 %v5528_v44 }
 0x1f0   :  { %3673 = vmatpush3.msra.mxu0 %v5491_v18  ;;  %3707 = vmatprep.subr.mxu1 %v6368_v26 }
 0x1f1   :  { %3674 = vmatprep.subr.mxu0 %v6368_v26  ;;  %3708 = vmatpush3.msra.mxu1 %v5544_v47  ;;  %v5612_v47 = vand.u32 4294901760, %v5601_v49 }
 0x1f2   :  { %3675 = vmatpush3.msra.mxu0 %v5509_v21  ;;  %3709 = vmatprep.subr.mxu1 %v6368_v26 }
 0x1f3   :  { %3676 = vmatprep.subr.mxu0 %v6368_v26  ;;  %3710 = vmatpush3.msra.mxu1 %v5572_v43  ;;  %v5605_v43 = vand.u32 4294901760, %v2101_v31  ;;  %6397 = vst [vmem:[#allocation39_spill] sm:$0xff] %v5612_v47  ;;  %v2115_v31 = vsub.f32 %v5601_v49, %v5612_v47 }
 0x1f4   :  { %3677 = vmatpush3.msra.mxu0 %v5520_v58  ;;  %3711 = vmatprep.subr.mxu1 %v6368_v26 }
 0x1f5   :  { %3678 = vmatprep.subr.mxu0 %v6368_v26  ;;  %3712 = vmatpush3.msra.mxu1 %v5575_v27  ;;  %6396 = vst [vmem:[#allocation37_spill] sm:$0xff] %v5605_v43 }
 0x1f6   :  { %3679 = vmatpush3.msra.mxu0 %v5535_v53  ;;  %3713 = vmatprep.subr.mxu1 %v6368_v26 }
 0x1f7   :  { %3680 = vmatprep.subr.mxu0 %v6368_v26  ;;  %3714 = vmatpush3.msra.mxu1 %v5591_v3  ;;  %v5624_v3 = vand.u32 4294901760, %v2115_v31  ;;  %v3237_v31 = vld [vmem:[%s6017_s4] ss:$0 sm:$0xff] }
 0x1f8   :  { %3681 = vmatpush3.msra.mxu0 %v5552_v14  ;;  %3715 = vmatprep.subr.mxu1 %v6368_v26 }
 0x1f9   :  { %3682 = vmatprep.subr.mxu0 %v6368_v26  ;;  %3716 = vmatpush3.msra.mxu1 %v5605_v43  ;;  %6399 = vst [vmem:[#allocation16_spill] sm:$0xff] %v5624_v3 }
 0x1fa   :  { %3683 = vmatpush3.msra.mxu0 %v5568_v13  ;;  %3717 = vmatprep.subr.mxu1 %v6368_v26 }
 0x1fb   :  { %3684 = vmatprep.subr.mxu0 %v6368_v26  ;;  %3718 = vmatpush3.msra.mxu1 %v5615_v51 }
 0x1fc   :  { %3685 = vmatpush3.msra.mxu0 %v5587_v30  ;;  %3719 = vmatprep.subr.mxu1 %v6368_v26 }
 0x1fd   :  { %3724 = vmatprep.subr.mxu0 %v6368_v26  ;;  %3720 = vmatpush3.msra.mxu1 %v5624_v3 }
 0x1fe   :  { %3759 = vmatprep.subr.mxu1 %v6368_v26 }
 0x253   :  { %v3307_v43 = vpop.f32.mrf.mxu1 }
 0x255   :  { %v3308_v62 = vpop.f32.mrf.mxu1 }
 0x256   :  { %v3309_v35 = vadd.f32 %v3308_v62, %v3307_v43  ;;  %v6403_v62 = vld [vmem:[#allocation32_spill] sm:$0xff]  ;;  %v6411_v43 = vld [vmem:[#allocation39_spill] sm:$0xff] }
 0x25b   :  { %v3272_v45 = vpop.f32.mrf.mxu0 }
 0x25d   :  { %v3273_v27 = vpop.f32.mrf.mxu0 }
 0x25e   :  { %v3274_v24 = vadd.f32 %v3273_v27, %v3272_v45 }
 0x260   :  { %v1145_v33 = vadd.f32 %v3274_v24, %v3237_v31  ;;  %v6416_v31 = vld [vmem:[#allocation21_spill] sm:$0xff] }
 0x262   :  { %v1377_v7 = vadd.f32 %v3309_v35, %v1145_v33  ;;  %v6400_v33 = vld [vmem:[#allocation20_spill] sm:$0xff] }
 0x274   :  { %v3377_v51 = vpop.f32.mrf.mxu1 }
 0x276   :  { %v3378_v47 = vpop.f32.mrf.mxu1 }
 0x277   :  { %v3379_v5 = vadd.f32 %v3378_v47, %v3377_v51  ;;  %v6408_v47 = vld [vmem:[#allocation17_spill] sm:$0xff]  ;;  %v6415_v51 = vld [vmem:[#allocation31_spill] sm:$0xff] }
 0x27c   :  { %v3342_v44 = vpop.f32.mrf.mxu0 }
 0x27e   :  { %v3343_v36 = vpop.f32.mrf.mxu0 }
 0x27f   :  { %v3344_v1 = vadd.f32 %v3343_v36, %v3342_v44  ;;  %v6401_v36 = vld [vmem:[#allocation25_spill] sm:$0xff]  ;;  %v6406_v44 = vld [vmem:[#allocation30_spill] sm:$0xff] }
 0x281   :  { %v1515_v40 = vadd.f32 %v3344_v1, %v1377_v7 }
 0x283   :  { %v1623_v41 = vadd.f32 %v3379_v5, %v1515_v40  ;;  %v6412_v5 = vld [vmem:[#allocation18_spill] sm:$0xff]  ;;  %v6414_v40 = vld [vmem:[#allocation19_spill] sm:$0xff] }
 0x296   :  { %v3447_v3 = vpop.f32.mrf.mxu1 }
 0x298   :  { %v3448_v42 = vpop.f32.mrf.mxu1 }
 0x299   :  { %v3449_v45 = vadd.f32 %v3448_v42, %v3447_v3  ;;  %v6410_v42 = vld [vmem:[#allocation28_spill] sm:$0xff]  ;;  %v6413_v3 = vld [vmem:[#allocation29_spill] sm:$0xff] }
 0x29d   :  { %v3412_v63 = vpop.f32.mrf.mxu0 }
 0x29f   :  { %v3413_v60 = vpop.f32.mrf.mxu0 }
 0x2a0   :  { %v3414_v27 = vadd.f32 %v3413_v60, %v3412_v63  ;;  %v6409_v60 = vld [vmem:[#allocation35_spill] sm:$0xff] }
 0x2a2   :  { %v1791_v25 = vadd.f32 %v3414_v27, %v1623_v41  ;;  %v6407_v41 = vld [vmem:[#allocation26_spill] sm:$0xff] }
 0x2a3   :  { %v6417_v27 = vld [vmem:[#allocation22_spill] sm:$0xff] }
 0x2a4   :  { %v1895_v48 = vadd.f32 %v3449_v45, %v1791_v25  ;;  %v6405_v25 = vld [vmem:[#allocation38_spill] sm:$0xff]  ;;  %v6418_v45 = vld [vmem:[#allocation23_spill] sm:$0xff] }
 0x2a6   :  { %v5634_v2 = vadd.f32 %v4095_v59, %v1895_v48  ;;  %v6402_v59 = vld [vmem:[#allocation34_spill] sm:$0xff]  ;;  %v6404_v48 = vld [vmem:[#allocation36_spill] sm:$0xff] }
 0x2a8   :  { %v5637_v24 = vand.u32 4294901760, %v5634_v2 }
 0x2aa   :  { %3722 = vmatmul.mubr.f32.vlgmr.msra.gmra.mxu1 %v5637_v24  ;;  %v5642_v7 = vsub.f32 %v5634_v2, %v5637_v24 }
 0x2ab   :  { %3760 = vmatpush3.msra.mxu1 %v5371_v50  ;;  %3791 = vmatprep.mubr.msk.f32.mxu1 %vm4213_vm0, %v6368_v26 }
 0x2ac   :  { %3761 = vmatprep.subr.mxu1 %v6368_v26  ;;  %v1998_v63 = vand.u32 4294901760, %v5642_v7 }
 0x2ad   :  { %3762 = vmatpush3.msra.mxu1 %v5373_v34 }
 0x2ae   :  { %3763 = vmatprep.subr.mxu1 %v6368_v26  ;;  %v1999_v1 = vsub.f32 %v5642_v7, %v1998_v63 }
 0x2af   :  { %3764 = vmatpush3.msra.mxu1 %v5375_v6 }
 0x2b0   :  { %3765 = vmatprep.subr.mxu1 %v6368_v26  ;;  %v2000_v35 = vand.u32 4294901760, %v1999_v1  ;;  %v6422_v1 = vld [vmem:[#allocation27_spill] sm:$0xff] }
 0x2b1   :  { %3766 = vmatpush3.msra.mxu1 %v5377_v17 }
 0x2b2   :  { %3767 = vmatprep.subr.mxu1 %v6368_v26  ;;  %3687 = vmatmul.mubr.f32.vlgmr.msra.gmra.mxu0 %v2000_v35  ;;  %v6423_v35 = vld [vmem:[#allocation37_spill] sm:$0xff] }
 0x2b3   :  { %3725 = vmatpush3.msra.mxu0 %v5380_v38  ;;  %3768 = vmatpush3.msra.mxu1 %v5383_v32 }
 0x2b4   :  { %3726 = vmatprep.subr.mxu0 %v6368_v26  ;;  %3769 = vmatprep.subr.mxu1 %v6368_v26 }
 0x2b5   :  { %3727 = vmatpush3.msra.mxu0 %v5388_v28  ;;  %3770 = vmatpush3.msra.mxu1 %v5385_v22 }
 0x2b6   :  { %3728 = vmatprep.subr.mxu0 %v6368_v26  ;;  %3771 = vmatprep.subr.mxu1 %v6368_v26 }
 0x2b7   :  { %3729 = vmatpush3.msra.mxu0 %v5391_v54  ;;  %3772 = vmatpush3.msra.mxu1 %v5452_v19 }
 0x2b8   :  { %3730 = vmatprep.subr.mxu0 %v6368_v26  ;;  %3773 = vmatprep.subr.mxu1 %v6368_v26 }
 0x2b9   :  { %3731 = vmatpush3.msra.mxu0 %v5394_v0  ;;  %3774 = vmatpush3.msra.mxu1 %v5463_v39 }
 0x2ba   :  { %3732 = vmatprep.subr.mxu0 %v6368_v26  ;;  %3775 = vmatprep.subr.mxu1 %v6368_v26 }
 0x2bb   :  { %3733 = vmatpush3.msra.mxu0 %v5401_v10  ;;  %3776 = vmatpush3.msra.mxu1 %v5477_v23 }
 0x2bc   :  { %3734 = vmatprep.subr.mxu0 %v6368_v26  ;;  %3777 = vmatprep.subr.mxu1 %v6368_v26 }
 0x2bd   :  { %3735 = vmatpush3.msra.mxu0 %v5405_v46  ;;  %3778 = vmatpush3.msra.mxu1 %v5491_v18 }
 0x2be   :  { %3736 = vmatprep.subr.mxu0 %v6368_v26  ;;  %3779 = vmatprep.subr.mxu1 %v6368_v26 }
 0x2bf   :  { %3737 = vmatpush3.msra.mxu0 %v5461_v9  ;;  %3780 = vmatpush3.msra.mxu1 %v5509_v21 }
 0x2c0   :  { %3738 = vmatprep.subr.mxu0 %v6368_v26  ;;  %3781 = vmatprep.subr.mxu1 %v6368_v26 }
 0x2c1   :  { %3739 = vmatpush3.msra.mxu0 %v5475_v11  ;;  %3782 = vmatpush3.msra.mxu1 %v5520_v58 }
 0x2c2   :  { %3740 = vmatprep.subr.mxu0 %v6368_v26  ;;  %3783 = vmatprep.subr.mxu1 %v6368_v26 }
 0x2c3   :  { %3741 = vmatpush3.msra.mxu0 %v5489_v8  ;;  %3784 = vmatpush3.msra.mxu1 %v5535_v53 }
 0x2c4   :  { %3742 = vmatprep.subr.mxu0 %v6368_v26  ;;  %3785 = vmatprep.subr.mxu1 %v6368_v26 }
 0x2c5   :  { %3743 = vmatpush3.msra.mxu0 %v5505_v52  ;;  %3786 = vmatpush3.msra.mxu1 %v5552_v14 }
 0x2c6   :  { %3744 = vmatprep.subr.mxu0 %v6368_v26  ;;  %3787 = vmatprep.subr.mxu1 %v6368_v26 }
 0x2c7   :  { %3745 = vmatpush3.msra.mxu0 %v5524_v55  ;;  %3788 = vmatpush3.msra.mxu1 %v5568_v13 }
 0x2c8   :  { %3746 = vmatprep.subr.mxu0 %v6368_v26  ;;  %3789 = vmatprep.subr.mxu1 %v6368_v26 }
 0x2c9   :  { %3747 = vmatpush3.msra.mxu0 %v5533_v16  ;;  %3790 = vmatpush3.msra.mxu1 %v5587_v30 }
 0x2ca   :  { %3748 = vmatprep.subr.mxu0 %v6368_v26  ;;  %3792 = vmatmul.mubr.f32.vlgmr.msra.gmra.mxu1 %v1998_v63  ;;  %v6421_v63 = vld [vmem:[#allocation33_spill] sm:$0xff] }
 0x2cb   :  { %3829 = vmatprep.subr.mxu1 %v6368_v26  ;;  %3749 = vmatpush3.msra.mxu0 %v5550_v15 }
 0x2cc   :  { %3830 = vmatpush3.msra.mxu1 %v5371_v50  ;;  %3750 = vmatprep.subr.mxu0 %v6368_v26 }
 0x2cd   :  { %3831 = vmatprep.subr.mxu1 %v6368_v26  ;;  %3751 = vmatpush3.msra.mxu0 %v5566_v29 }
 0x2ce   :  { %3832 = vmatpush3.msra.mxu1 %v5373_v34  ;;  %3752 = vmatprep.subr.mxu0 %v6368_v26 }
 0x2cf   :  { %3833 = vmatprep.subr.mxu1 %v6368_v26  ;;  %3753 = vmatpush3.msra.mxu0 %v5583_v12 }
 0x2d0   :  { %3834 = vmatpush3.msra.mxu1 %v5375_v6  ;;  %3754 = vmatprep.subr.mxu0 %v6368_v26 }
 0x2d1   :  { %3835 = vmatprep.subr.mxu1 %v6368_v26  ;;  %3755 = vmatpush3.msra.mxu0 %v5601_v49 }
 0x2d2   :  { %3756 = vmatprep.mubr.msk.f32.mxu0 %vm4213_vm0, %v6368_v26  ;;  %3836 = vmatpush3.msra.mxu1 %v5377_v17 }
 0x2d3   :  { %3757 = vmatmul.mubr.f32.vlgmr.msra.gmra.mxu0 %v5642_v7  ;;  %3794 = vmatprep.subr.mxu0 %v6368_v26  ;;  %v6420_v7 = vld [vmem:[#allocation15_spill] sm:$0xff] }
 0x2d4   :  { %3837 = vmatprep.subr.mxu1 %v6368_v26  ;;  %3795 = vmatpush3.msra.mxu0 %v5398_v61 }
 0x2d5   :  { %3838 = vmatpush3.msra.mxu1 %v5383_v32  ;;  %3796 = vmatprep.subr.mxu0 %v6368_v26 }
 0x2d6   :  { %3839 = vmatprep.subr.mxu1 %v6368_v26  ;;  %3797 = vmatpush3.msra.mxu0 %v5408_v20 }
 0x2d7   :  { %3840 = vmatpush3.msra.mxu1 %v5385_v22  ;;  %3798 = vmatprep.subr.mxu0 %v6368_v26 }
 0x2d8   :  { %3841 = vmatprep.subr.mxu1 %v6368_v26  ;;  %3799 = vmatpush3.msra.mxu0 %v5411_v56 }
 0x2d9   :  { %3842 = vmatpush3.msra.mxu1 %v5452_v19  ;;  %3800 = vmatprep.subr.mxu0 %v6368_v26 }
 0x2da   :  { %3843 = vmatprep.subr.mxu1 %v6368_v26  ;;  %3801 = vmatpush3.msra.mxu0 %v5414_v37 }
 0x2db   :  { %3844 = vmatpush3.msra.mxu1 %v5463_v39  ;;  %3802 = vmatprep.subr.mxu0 %v6368_v26 }
 0x2dc   :  { %3845 = vmatprep.subr.mxu1 %v6368_v26  ;;  %3803 = vmatpush3.msra.mxu0 %v5420_v57 }
 0x2dd   :  { %3846 = vmatpush3.msra.mxu1 %v5477_v23  ;;  %3804 = vmatprep.subr.mxu0 %v6368_v26 }
 0x2de   :  { %3847 = vmatprep.subr.mxu1 %v6368_v26  ;;  %3805 = vmatpush3.msra.mxu0 %v5433_v4 }
 0x2df   :  { %3848 = vmatpush3.msra.mxu1 %v5491_v18  ;;  %3806 = vmatprep.subr.mxu0 %v6368_v26 }
 0x2e0   :  { %3849 = vmatprep.subr.mxu1 %v6368_v26  ;;  %3807 = vmatpush3.msra.mxu0 %v6400_v33 }
 0x2e1   :  { %3850 = vmatpush3.msra.mxu1 %v5509_v21  ;;  %3808 = vmatprep.subr.mxu0 %v6368_v26 }
 0x2e2   :  { %3851 = vmatprep.subr.mxu1 %v6368_v26  ;;  %3809 = vmatpush3.msra.mxu0 %v6401_v36 }
 0x2e3   :  { %3852 = vmatpush3.msra.mxu1 %v5520_v58  ;;  %3810 = vmatprep.subr.mxu0 %v6368_v26 }
 0x2e4   :  { %3853 = vmatprep.subr.mxu1 %v6368_v26  ;;  %3811 = vmatpush3.msra.mxu0 %v6402_v59 }
 0x2e5   :  { %3854 = vmatpush3.msra.mxu1 %v5535_v53  ;;  %3812 = vmatprep.subr.mxu0 %v6368_v26 }
 0x2e6   :  { %3855 = vmatprep.subr.mxu1 %v6368_v26  ;;  %3813 = vmatpush3.msra.mxu0 %v6403_v62 }
 0x2e7   :  { %3856 = vmatpush3.msra.mxu1 %v5552_v14  ;;  %3814 = vmatprep.subr.mxu0 %v6368_v26 }
 0x2e8   :  { %3857 = vmatprep.subr.mxu1 %v6368_v26  ;;  %3815 = vmatpush3.msra.mxu0 %v6404_v48 }
 0x2e9   :  { %3858 = vmatpush3.msra.mxu1 %v5568_v13  ;;  %3816 = vmatprep.subr.mxu0 %v6368_v26 }
 0x2ea   :  { %3859 = vmatprep.subr.mxu1 %v6368_v26  ;;  %3817 = vmatpush3.msra.mxu0 %v6405_v25 }
 0x2eb   :  { %3860 = vmatpush3.msra.mxu1 %v5587_v30  ;;  %3861 = vmatprep.mubr.msk.f32.mxu1 %vm4213_vm0, %v6368_v26 }
 0x2ec   :  { %3818 = vmatprep.subr.mxu0 %v6368_v26  ;;  %3862 = vmatmul.mubr.f32.vlgmr.msra.gmra.mxu1 %v5637_v24 }
 0x2ed   :  { %3819 = vmatpush3.msra.mxu0 %v6406_v44  ;;  %3826 = vmatprep.mubr.msk.f32.mxu0 %vm4213_vm0, %v6368_v26 }
 0x2ee   :  { %3820 = vmatprep.subr.mxu0 %v6368_v26  ;;  %3899 = vmatprep.subr.mxu1 %v6368_v26 }
 0x2ef   :  { %3821 = vmatpush3.msra.mxu0 %v6407_v41  ;;  %3900 = vmatpush3.msra.mxu1 %v6408_v47  ;;  %v6424_v47 = vld [vmem:[#allocation40_spill] sm:$0xff] }
 0x2f0   :  { %3822 = vmatprep.subr.mxu0 %v6368_v26  ;;  %3901 = vmatprep.subr.mxu1 %v6368_v26 }
 0x2f1   :  { %3823 = vmatpush3.msra.mxu0 %v6409_v60  ;;  %3902 = vmatpush3.msra.mxu1 %v6410_v42  ;;  %v6425_v42 = vld [vmem:[#allocation16_spill] sm:$0xff] }
 0x2f2   :  { %3824 = vmatprep.subr.mxu0 %v6368_v26  ;;  %3903 = vmatprep.subr.mxu1 %v6368_v26 }
 0x2f3   :  { %3825 = vmatpush3.msra.mxu0 %v6411_v43  ;;  %3904 = vmatpush3.msra.mxu1 %v6412_v5 }
 0x2f4   :  { %3827 = vmatmul.mubr.f32.vlgmr.msra.gmra.mxu0 %v5637_v24  ;;  %3905 = vmatprep.subr.mxu1 %v6368_v26  ;;  %v6419_v24 = vld [vmem:[#allocation24_spill] sm:$0xff] }
 0x2f5   :  { %3906 = vmatpush3.msra.mxu1 %v6413_v3  ;;  %3864 = vmatprep.subr.mxu0 %v6368_v26 }
 0x2f6   :  { %3907 = vmatprep.subr.mxu1 %v6368_v26  ;;  %3865 = vmatpush3.msra.mxu0 %v5371_v50 }
 0x2f7   :  { %3908 = vmatpush3.msra.mxu1 %v6414_v40  ;;  %3866 = vmatprep.subr.mxu0 %v6368_v26 }
 0x2f8   :  { %3909 = vmatprep.subr.mxu1 %v6368_v26  ;;  %3867 = vmatpush3.msra.mxu0 %v5373_v34 }
 0x2f9   :  { %3910 = vmatpush3.msra.mxu1 %v6415_v51  ;;  %3868 = vmatprep.subr.mxu0 %v6368_v26 }
 0x2fa   :  { %3911 = vmatprep.subr.mxu1 %v6368_v26  ;;  %3869 = vmatpush3.msra.mxu0 %v5375_v6 }
 0x2fb   :  { %3912 = vmatpush3.msra.mxu1 %v6416_v31  ;;  %3870 = vmatprep.subr.mxu0 %v6368_v26 }
 0x2fc   :  { %3913 = vmatprep.subr.mxu1 %v6368_v26  ;;  %3871 = vmatpush3.msra.mxu0 %v5377_v17 }
 0x2fd   :  { %3914 = vmatpush3.msra.mxu1 %v6417_v27  ;;  %3872 = vmatprep.subr.mxu0 %v6368_v26 }
 0x2fe   :  { %3915 = vmatprep.subr.mxu1 %v6368_v26  ;;  %3873 = vmatpush3.msra.mxu0 %v5383_v32 }
 0x2ff   :  { %3916 = vmatpush3.msra.mxu1 %v6418_v45  ;;  %3874 = vmatprep.subr.mxu0 %v6368_v26 }
 0x300   :  { %3917 = vmatprep.subr.mxu1 %v6368_v26  ;;  %3875 = vmatpush3.msra.mxu0 %v5385_v22 }
 0x301   :  { %3918 = vmatpush3.msra.mxu1 %v6419_v24  ;;  %3876 = vmatprep.subr.mxu0 %v6368_v26 }
 0x302   :  { %3919 = vmatprep.subr.mxu1 %v6368_v26  ;;  %3877 = vmatpush3.msra.mxu0 %v5452_v19 }
 0x303   :  { %3920 = vmatpush3.msra.mxu1 %v6420_v7  ;;  %3878 = vmatprep.subr.mxu0 %v6368_v26 }
 0x304   :  { %3921 = vmatprep.subr.mxu1 %v6368_v26  ;;  %3879 = vmatpush3.msra.mxu0 %v5463_v39 }
 0x305   :  { %3922 = vmatpush3.msra.mxu1 %v6421_v63  ;;  %3880 = vmatprep.subr.mxu0 %v6368_v26 }
 0x306   :  { %3923 = vmatprep.subr.mxu1 %v6368_v26  ;;  %3881 = vmatpush3.msra.mxu0 %v5477_v23 }
 0x307   :  { %3924 = vmatpush3.msra.mxu1 %v6422_v1  ;;  %3882 = vmatprep.subr.mxu0 %v6368_v26 }
 0x308   :  { %3925 = vmatprep.subr.mxu1 %v6368_v26  ;;  %3883 = vmatpush3.msra.mxu0 %v5491_v18 }
 0x309   :  { %3926 = vmatpush3.msra.mxu1 %v6423_v35  ;;  %3884 = vmatprep.subr.mxu0 %v6368_v26 }
 0x30a   :  { %3927 = vmatprep.subr.mxu1 %v6368_v26  ;;  %3885 = vmatpush3.msra.mxu0 %v5509_v21 }
 0x30b   :  { %3928 = vmatpush3.msra.mxu1 %v6424_v47  ;;  %3886 = vmatprep.subr.mxu0 %v6368_v26 }
 0x30c   :  { %3929 = vmatprep.subr.mxu1 %v6368_v26  ;;  %3887 = vmatpush3.msra.mxu0 %v5520_v58 }
 0x30d   :  { %3930 = vmatpush3.msra.mxu1 %v6425_v42  ;;  %3888 = vmatprep.subr.mxu0 %v6368_v26 }
 0x30e   :  { %3931 = vmatprep.mubr.msk.f32.mxu1 %vm4213_vm0, %v6368_v26  ;;  %3969 = vmatprep.subr.mxu1 %v6368_v26 }
 0x30f   :  { %3889 = vmatpush3.msra.mxu0 %v5535_v53  ;;  %3896 = vmatprep.mubr.msk.f32.mxu0 %vm4213_vm0, %v6368_v26 }
 0x310   :  { %3890 = vmatprep.subr.mxu0 %v6368_v26 }
 0x311   :  { %3891 = vmatpush3.msra.mxu0 %v5552_v14 }
 0x312   :  { %3892 = vmatprep.subr.mxu0 %v6368_v26 }
 0x313   :  { %3893 = vmatpush3.msra.mxu0 %v5568_v13 }
 0x314   :  { %3894 = vmatprep.subr.mxu0 %v6368_v26 }
 0x315   :  { %3895 = vmatpush3.msra.mxu0 %v5587_v30 }
 0x316   :  { %3934 = vmatprep.subr.mxu0 %v6368_v26 }
 0x36a   :  { %v2153_v5 = vpop.f32.mrf.mxu1 }
 0x36c   :  { %v3723_v3 = vpop.f32.mrf.mxu1 }
 0x372   :  { %v2002_v40 = vpop.f32.mrf.mxu0 }
 0x373   :  { %v2154_v63 = vadd.f32 %v2153_v5, %v2002_v40 }
 0x374   :  { %v3688_v51 = vpop.f32.mrf.mxu0 }
 0x38a   :  { %v2346_v31 = vpop.f32.mrf.mxu1 }
 0x38c   :  { %v3793_v27 = vpop.f32.mrf.mxu1 }
 0x393   :  { %v2257_v45 = vpop.f32.mrf.mxu0 }
 0x394   :  { %v2258_v35 = vadd.f32 %v2257_v45, %v2154_v63 }
 0x395   :  { %v3758_v24 = vpop.f32.mrf.mxu0 }
 0x396   :  { %v2347_v47 = vadd.f32 %v2346_v31, %v2258_v35 }
 0x3ac   :  { %v2552_v7 = vpop.f32.mrf.mxu1 }
 0x3ae   :  { %v3863_v1 = vpop.f32.mrf.mxu1 }
 0x3b4   :  { %v2465_v42 = vpop.f32.mrf.mxu0 }
 0x3b5   :  { %v2466_v43 = vadd.f32 %v2465_v42, %v2347_v47 }
 0x3b6   :  { %v3828_v60 = vpop.f32.mrf.mxu0 }
 0x3b7   :  { %v2553_v41 = vadd.f32 %v2552_v7, %v2466_v43 }
 0x3b9   :  { %v5854_v44 = vsub.f32 %v5634_v2, %v2553_v41 }
 0x3bb   :  { %v2557_v3 = vmul.f32 %v5854_v44, %v5854_v44 }
 0x3bd   :  { %v5858_v51 = vand.u32 4294901760, %v2557_v3 }
 0x3bf   :  { %3932 = vmatmul.mubr.f32.vlgmr.msra.gmra.mxu1 %v5858_v51  ;;  %v5862_v27 = vsub.f32 %v2557_v3, %v5858_v51 }
 0x3c0   :  { %3970 = vmatpush3.msra.mxu1 %v5371_v50  ;;  %4001 = vmatprep.mubr.msk.f32.mxu1 %vm4213_vm0, %v6368_v26 }
 0x3c1   :  { %3971 = vmatprep.subr.mxu1 %v6368_v26  ;;  %v2641_v2 = vand.u32 4294901760, %v5862_v27 }
 0x3c2   :  { %3972 = vmatpush3.msra.mxu1 %v5373_v34 }
 0x3c3   :  { %3973 = vmatprep.subr.mxu1 %v6368_v26  ;;  %v2642_v41 = vsub.f32 %v5862_v27, %v2641_v2 }
 0x3c4   :  { %3974 = vmatpush3.msra.mxu1 %v5375_v6 }
 0x3c5   :  { %3975 = vmatprep.subr.mxu1 %v6368_v26  ;;  %v2643_v60 = vand.u32 4294901760, %v2642_v41 }
 0x3c6   :  { %3976 = vmatpush3.msra.mxu1 %v5377_v17 }
 0x3c7   :  { %3977 = vmatprep.subr.mxu1 %v6368_v26  ;;  %3897 = vmatmul.mubr.f32.vlgmr.msra.gmra.mxu0 %v2643_v60 }
 0x3c8   :  { %3935 = vmatpush3.msra.mxu0 %v5380_v38  ;;  %3978 = vmatpush3.msra.mxu1 %v5383_v32 }
 0x3c9   :  { %3936 = vmatprep.subr.mxu0 %v6368_v26  ;;  %3979 = vmatprep.subr.mxu1 %v6368_v26 }
 0x3ca   :  { %3937 = vmatpush3.msra.mxu0 %v5388_v28  ;;  %3980 = vmatpush3.msra.mxu1 %v5385_v22 }
 0x3cb   :  { %3938 = vmatprep.subr.mxu0 %v6368_v26  ;;  %3981 = vmatprep.subr.mxu1 %v6368_v26 }
 0x3cc   :  { %3939 = vmatpush3.msra.mxu0 %v5391_v54  ;;  %3982 = vmatpush3.msra.mxu1 %v5452_v19 }
 0x3cd   :  { %3940 = vmatprep.subr.mxu0 %v6368_v26  ;;  %3983 = vmatprep.subr.mxu1 %v6368_v26 }
 0x3ce   :  { %3941 = vmatpush3.msra.mxu0 %v5394_v0  ;;  %3984 = vmatpush3.msra.mxu1 %v5463_v39 }
 0x3cf   :  { %3942 = vmatprep.subr.mxu0 %v6368_v26  ;;  %3985 = vmatprep.subr.mxu1 %v6368_v26 }
 0x3d0   :  { %3943 = vmatpush3.msra.mxu0 %v5401_v10  ;;  %3986 = vmatpush3.msra.mxu1 %v5477_v23 }
 0x3d1   :  { %3944 = vmatprep.subr.mxu0 %v6368_v26  ;;  %3987 = vmatprep.subr.mxu1 %v6368_v26 }
 0x3d2   :  { %3945 = vmatpush3.msra.mxu0 %v5405_v46  ;;  %3988 = vmatpush3.msra.mxu1 %v5491_v18 }
 0x3d3   :  { %3946 = vmatprep.subr.mxu0 %v6368_v26  ;;  %3989 = vmatprep.subr.mxu1 %v6368_v26 }
 0x3d4   :  { %3947 = vmatpush3.msra.mxu0 %v5461_v9  ;;  %3990 = vmatpush3.msra.mxu1 %v5509_v21 }
 0x3d5   :  { %3948 = vmatprep.subr.mxu0 %v6368_v26  ;;  %3991 = vmatprep.subr.mxu1 %v6368_v26 }
 0x3d6   :  { %3949 = vmatpush3.msra.mxu0 %v5475_v11  ;;  %3992 = vmatpush3.msra.mxu1 %v5520_v58 }
 0x3d7   :  { %3950 = vmatprep.subr.mxu0 %v6368_v26  ;;  %3993 = vmatprep.subr.mxu1 %v6368_v26 }
 0x3d8   :  { %3951 = vmatpush3.msra.mxu0 %v5489_v8  ;;  %3994 = vmatpush3.msra.mxu1 %v5535_v53 }
 0x3d9   :  { %3952 = vmatprep.subr.mxu0 %v6368_v26  ;;  %3995 = vmatprep.subr.mxu1 %v6368_v26 }
 0x3da   :  { %3953 = vmatpush3.msra.mxu0 %v5505_v52  ;;  %3996 = vmatpush3.msra.mxu1 %v5552_v14 }
 0x3db   :  { %3954 = vmatprep.subr.mxu0 %v6368_v26  ;;  %3997 = vmatprep.subr.mxu1 %v6368_v26 }
 0x3dc   :  { %3955 = vmatpush3.msra.mxu0 %v5524_v55  ;;  %3998 = vmatpush3.msra.mxu1 %v5568_v13 }
 0x3dd   :  { %3956 = vmatprep.subr.mxu0 %v6368_v26  ;;  %3999 = vmatprep.subr.mxu1 %v6368_v26 }
 0x3de   :  { %3957 = vmatpush3.msra.mxu0 %v5533_v16  ;;  %4000 = vmatpush3.msra.mxu1 %v5587_v30 }
 0x3df   :  { %3958 = vmatprep.subr.mxu0 %v6368_v26  ;;  %4002 = vmatmul.mubr.f32.vlgmr.msra.gmra.mxu1 %v2641_v2 }
 0x3e0   :  { %4039 = vmatprep.subr.mxu1 %v6368_v26  ;;  %3959 = vmatpush3.msra.mxu0 %v5550_v15 }
 0x3e1   :  { %4040 = vmatpush3.msra.mxu1 %v5371_v50  ;;  %3960 = vmatprep.subr.mxu0 %v6368_v26  ;;  %v6426_v50 = vld [vmem:[#allocation30_spill] sm:$0xff] }
 0x3e2   :  { %4041 = vmatprep.subr.mxu1 %v6368_v26  ;;  %3961 = vmatpush3.msra.mxu0 %v5566_v29 }
 0x3e3   :  { %4042 = vmatpush3.msra.mxu1 %v5373_v34  ;;  %3962 = vmatprep.subr.mxu0 %v6368_v26  ;;  %v6427_v34 = vld [vmem:[#allocation26_spill] sm:$0xff] }
 0x3e4   :  { %4043 = vmatprep.subr.mxu1 %v6368_v26  ;;  %3963 = vmatpush3.msra.mxu0 %v5583_v12 }
 0x3e5   :  { %4044 = vmatpush3.msra.mxu1 %v5375_v6  ;;  %3964 = vmatprep.subr.mxu0 %v6368_v26  ;;  %v6428_v6 = vld [vmem:[#allocation35_spill] sm:$0xff] }
 0x3e6   :  { %4045 = vmatprep.subr.mxu1 %v6368_v26  ;;  %3965 = vmatpush3.msra.mxu0 %v5601_v49 }
 0x3e7   :  { %3966 = vmatprep.mubr.msk.f32.mxu0 %vm4213_vm0, %v6368_v26  ;;  %4046 = vmatpush3.msra.mxu1 %v5377_v17  ;;  %v6429_v17 = vld [vmem:[#allocation39_spill] sm:$0xff] }
 0x3e8   :  { %3967 = vmatmul.mubr.f32.vlgmr.msra.gmra.mxu0 %v5862_v27  ;;  %4004 = vmatprep.subr.mxu0 %v6368_v26 }
 0x3e9   :  { %4047 = vmatprep.subr.mxu1 %v6368_v26  ;;  %4005 = vmatpush3.msra.mxu0 %v5398_v61 }
 0x3ea   :  { %4048 = vmatpush3.msra.mxu1 %v5383_v32  ;;  %4006 = vmatprep.subr.mxu0 %v6368_v26 }
 0x3eb   :  { %4049 = vmatprep.subr.mxu1 %v6368_v26  ;;  %4007 = vmatpush3.msra.mxu0 %v5408_v20 }
 0x3ec   :  { %4050 = vmatpush3.msra.mxu1 %v5385_v22  ;;  %4008 = vmatprep.subr.mxu0 %v6368_v26 }
 0x3ed   :  { %4051 = vmatprep.subr.mxu1 %v6368_v26  ;;  %4009 = vmatpush3.msra.mxu0 %v5411_v56 }
 0x3ee   :  { %4052 = vmatpush3.msra.mxu1 %v5452_v19  ;;  %4010 = vmatprep.subr.mxu0 %v6368_v26 }
 0x3ef   :  { %4053 = vmatprep.subr.mxu1 %v6368_v26  ;;  %4011 = vmatpush3.msra.mxu0 %v5414_v37 }
 0x3f0   :  { %4054 = vmatpush3.msra.mxu1 %v5463_v39  ;;  %4012 = vmatprep.subr.mxu0 %v6368_v26 }
 0x3f1   :  { %4055 = vmatprep.subr.mxu1 %v6368_v26  ;;  %4013 = vmatpush3.msra.mxu0 %v5420_v57 }
 0x3f2   :  { %4056 = vmatpush3.msra.mxu1 %v5477_v23  ;;  %4014 = vmatprep.subr.mxu0 %v6368_v26  ;;  %v3238_v23 = vld [vmem:[%s6018_s5] ss:$0 sm:$0xff] }
 0x3f3   :  { %4057 = vmatprep.subr.mxu1 %v6368_v26  ;;  %4015 = vmatpush3.msra.mxu0 %v5433_v4 }
 0x3f4   :  { %4058 = vmatpush3.msra.mxu1 %v5491_v18  ;;  %4016 = vmatprep.subr.mxu0 %v6368_v26  ;;  %v3239_v18 = vld [vmem:[%s6019_s6] ss:$0 sm:$0xff] }
 0x3f5   :  { %4059 = vmatprep.subr.mxu1 %v6368_v26  ;;  %4017 = vmatpush3.msra.mxu0 %v6400_v33 }
 0x3f6   :  { %4060 = vmatpush3.msra.mxu1 %v5509_v21  ;;  %4018 = vmatprep.subr.mxu0 %v6368_v26 }
 0x3f7   :  { %4061 = vmatprep.subr.mxu1 %v6368_v26  ;;  %4019 = vmatpush3.msra.mxu0 %v6401_v36 }
 0x3f8   :  { %4062 = vmatpush3.msra.mxu1 %v5520_v58  ;;  %4020 = vmatprep.subr.mxu0 %v6368_v26 }
 0x3f9   :  { %4063 = vmatprep.subr.mxu1 %v6368_v26  ;;  %4021 = vmatpush3.msra.mxu0 %v6402_v59 }
 0x3fa   :  { %4064 = vmatpush3.msra.mxu1 %v5535_v53  ;;  %4022 = vmatprep.subr.mxu0 %v6368_v26 }
 0x3fb   :  { %4065 = vmatprep.subr.mxu1 %v6368_v26  ;;  %4023 = vmatpush3.msra.mxu0 %v6403_v62 }
 0x3fc   :  { %4066 = vmatpush3.msra.mxu1 %v5552_v14  ;;  %4024 = vmatprep.subr.mxu0 %v6368_v26 }
 0x3fd   :  { %4067 = vmatprep.subr.mxu1 %v6368_v26  ;;  %4025 = vmatpush3.msra.mxu0 %v6404_v48 }
 0x3fe   :  { %4068 = vmatpush3.msra.mxu1 %v5568_v13  ;;  %4026 = vmatprep.subr.mxu0 %v6368_v26 }
 0x3ff   :  { %4069 = vmatprep.subr.mxu1 %v6368_v26  ;;  %4027 = vmatpush3.msra.mxu0 %v6405_v25 }
 0x400   :  { %4070 = vmatpush3.msra.mxu1 %v5587_v30  ;;  %4071 = vmatprep.mubr.msk.f32.mxu1 %vm4213_vm0, %v6368_v26 }
 0x401   :  { %4028 = vmatprep.subr.mxu0 %v6368_v26  ;;  %4072 = vmatmul.mubr.f32.vlgmr.msra.gmra.mxu1 %v5858_v51 }
 0x402   :  { %4029 = vmatpush3.msra.mxu0 %v6426_v50  ;;  %4036 = vmatprep.mubr.msk.f32.mxu0 %vm4213_vm0, %v6368_v26 }
 0x403   :  { %4030 = vmatprep.subr.mxu0 %v6368_v26 }
 0x404   :  { %4031 = vmatpush3.msra.mxu0 %v6427_v34 }
 0x405   :  { %4032 = vmatprep.subr.mxu0 %v6368_v26 }
 0x406   :  { %4033 = vmatpush3.msra.mxu0 %v6428_v6 }
 0x407   :  { %4034 = vmatprep.subr.mxu0 %v6368_v26 }
 0x408   :  { %4035 = vmatpush3.msra.mxu0 %v6429_v17 }
 0x409   :  { %4037 = vmatmul.mubr.f32.vlgmr.msra.gmra.mxu0 %v5858_v51 }
 0x47f   :  { %v2796_v38 = vpop.f32.mrf.mxu1 }
 0x481   :  { %v3933_v32 = vpop.f32.mrf.mxu1 }
 0x487   :  { %v2645_v22 = vpop.f32.mrf.mxu0 }
 0x488   :  { %v2646_v46 = vadd.f32 1e-05, %v2645_v22 }
 0x489   :  { %v3898_v28 = vpop.f32.mrf.mxu0 }
 0x48a   :  { %v2797_v56 = vadd.f32 %v2796_v38, %v2646_v46 }
 0x49f   :  { %v2989_v54 = vpop.f32.mrf.mxu1 }
 0x4a1   :  { %v4003_v0 = vpop.f32.mrf.mxu1 }
 0x4a8   :  { %v2900_v61 = vpop.f32.mrf.mxu0 }
 0x4a9   :  { %v2901_v57 = vadd.f32 %v2900_v61, %v2797_v56 }
 0x4aa   :  { %v3968_v10 = vpop.f32.mrf.mxu0 }
 0x4ab   :  { %v2990_v4 = vadd.f32 %v2989_v54, %v2901_v57 }
 0x4c1   :  { %v3195_v20 = vpop.f32.mrf.mxu1 }
 0x4c3   :  { %v4073_v37 = vpop.f32.mrf.mxu1 }
 0x4c9   :  { %v3108_v19 = vpop.f32.mrf.mxu0 }
 0x4ca   :  { %v3109_v26 = vadd.f32 %v3108_v19, %v2990_v4 }
 0x4cb   :  { %v4038_v9 = vpop.f32.mrf.mxu0 }
 0x4cc   :  { %v3196_v39 = vadd.f32 %v3195_v20, %v3109_v26 }
 0x4ce   :  { %4093 = vrsqrt.f32 %v3196_v39 }
 0x4db   :  { %v4094_v11 = vpop.eup %4093 }
 0x4dc   :  { %v3200_v8 = vmul.f32 %v4094_v11, %v5854_v44 }
 0x4de   :  { %v3208_v52 = vmul.f32 %v3238_v23, %v3200_v8 }
 0x4e0   :  { %v3216_v21 = vadd.f32 %v3239_v18, %v3208_v52 }
 0x4e2   :  { %3217 = vst [vmem:[#allocation10] sm:$0xf] %v3216_v21 }
 0x4e3   :  { %4187 = shalt.err (!%p4184_p10)
}
 0x4e4   :  { %3227 = dma.vmem_to_hbm [thread:$0]  %s3225_s10, 64, %s6021_s8, [#allocation4]  }
 0x4e5   :  { %4202 = dma.done.wait [#allocation4], 64  }
 0x4e6   :  { %4203 = vsyncadd [#allocation4], 4294967232 }
 0x4e7   :  { %3231 = vsyncpa [#allocation3], 1 }
 0x4e8   :  { %3232 = vsyncpa [#allocation6], 1 }
 0x4e9   :  { %3233 = vsyncpa [#allocation9], 1 }
 0x4ea   :  { %3234 = vsyncpa [#allocation4], 1 }

</bundles_post_ra>
